<compile_context>
chip_gen: v7x
topology: tpu7x:2x2x1
jax: 0.10.0
libtpu: 0.0.40
codegen_flags: <defaults>
</compile_context>

<pallas_src>
import jax
import jax.numpy as jnp
from jax.experimental import pallas as pl
from jax.experimental.pallas import tpu as pltpu

# Model dims (from the module __init__)
IN_CHANNELS = 4
H1 = 32            # conv1 out
H2 = 16            # conv2 out == LSTM input_size
HL = 8             # LSTM hidden_size
N_NODES = 16
C_PAD = 8          # node-feature channels zero-padded to a full sublane group

# Tiling
SLAB = 256                     # nodes per lane-slab (matches v6e/v7x 256-wide MXU)
TB = SLAB // N_NODES           # graphs per slab (16)
G = 4                          # slabs per grid step -> 1024 nodes / 64 graphs per step
GRAPHS_PER_STEP = G * TB

# Packed-parameter row layout (all offsets 8-aligned):
#   wpack [72, 32]  : rows  0:32 cols 0:8  -> W1^T (zero-padded K)
#                     rows 32:48 cols 0:32 -> W2^T
#                     rows 48:72 cols 0:16 -> W_ih[i,g,o]^T
#   bpack [88, 256] : rows  0:32 -> b1 ; 32:48 -> b2 ; 48:72 -> b_ih+b_hh [i,g,o]
#                     rows 72:80 -> W_out (broadcast along lanes) ; row 80 -> b_out
WPACK_ROWS = 72
BPACK_ROWS = 88


def gnn_lstm_kernel(a_ref, x_ref, w_ref, b_ref, o_ref):
    f32 = jnp.float32
    a = a_ref[...]                       # [256, 256] resident block-diag A_hat^T

    # Static, 8-aligned slices of the resident parameter buffers (hoisted out of the loop).
    w1 = w_ref[0:32, 0:8]                # [32, 8]
    w2 = w_ref[32:48, 0:32]              # [16, 32]
    wg = w_ref[48:72, 0:16]              # [24, 16]
    b1 = b_ref[0:32]                     # [32, 256] pre-broadcast
    b2 = b_ref[32:48]                    # [16, 256]
    bg = b_ref[48:72]                    # [24, 256]
    wo = b_ref[72:80]                    # [8,  256] W_out broadcast along lanes
    bo = b_ref[80:81]                    # [1,  256]

    # Unrolled loop over G independent 256-node slabs per grid step.
    for g in range(G):
        lo = g * SLAB
        hi = lo + SLAB
        x = x_ref[:, lo:hi]                                                # [8, 256]
        # GCNConv 1 (transposed): (A @ (X @ W1))^T = W1^T X^T A^T
        t1 = jnp.dot(w1, x, preferred_element_type=f32)                    # [32, 256]
        h1 = jnp.maximum(jnp.dot(t1, a, preferred_element_type=f32) + b1, 0.0)
        # GCNConv 2
        t2 = jnp.dot(w2, h1, preferred_element_type=f32)                   # [16, 256]
        h2 = jnp.maximum(jnp.dot(t2, a, preferred_element_type=f32) + b2, 0.0)
        # Single-step LSTM with h0 = c0 = 0: only i, g, o gates are live.
        gates = jnp.dot(wg, h2, preferred_element_type=f32) + bg           # [24, 256]
        i_g = jax.nn.sigmoid(gates[0:8])                                   # sublane-block slices
        g_g = jnp.tanh(gates[8:16])
        o_g = jax.nn.sigmoid(gates[16:24])
        h = o_g * jnp.tanh(i_g * g_g)                                      # [8, 256]
        # Output Linear(8, 1): VPU multiply + 8-sublane reduce (no tiny MXU round trip).
        y = jnp.sum(h * wo, axis=0, keepdims=True) + bo                    # [1, 256]
        o_ref[0, :, lo:hi] = y                                             # lane-aligned store


def pack_params(params):
    """One-time glue: fold bih+bhh, drop the forget gate, pre-broadcast biases/W_out."""
    w1, b1, w2, b2, wih, bih, bhh, wout, bout = params
    wih_igo = jnp.concatenate([wih[:, 0:HL], wih[:, 2 * HL:4 * HL]], axis=1)     # [16, 24]
    b_igo = bih + bhh
    b_igo = jnp.concatenate([b_igo[:, 0:HL], b_igo[:, 2 * HL:4 * HL]], axis=1)   # [1, 24]

    wpack = jnp.zeros((WPACK_ROWS, 32), jnp.float32)
    wpack = wpack.at[0:32, 0:IN_CHANNELS].set(w1.T)
    wpack = wpack.at[32:48, 0:32].set(w2.T)
    wpack = wpack.at[48:72, 0:16].set(wih_igo.T)

    bpack = jnp.zeros((BPACK_ROWS, SLAB), jnp.float32)
    bpack = bpack.at[0:32, :].set(jnp.broadcast_to(b1[0][:, None], (H1, SLAB)))
    bpack = bpack.at[32:48, :].set(jnp.broadcast_to(b2[0][:, None], (H2, SLAB)))
    bpack = bpack.at[48:72, :].set(jnp.broadcast_to(b_igo[0][:, None], (3 * HL, SLAB)))
    bpack = bpack.at[72:80, :].set(jnp.broadcast_to(wout, (HL, SLAB)))
    bpack = bpack.at[80, :].set(bout[0, 0])
    return wpack, bpack


def build_blockdiag_at(a_hat):
    """TB copies of A_hat^T on the diagonal of a [SLAB, SLAB] tile (built once, resident)."""
    eye = jnp.eye(TB, dtype=a_hat.dtype)
    return jnp.einsum('jk,pq->jpkq', eye, a_hat.T).reshape(SLAB, SLAB)


def pack_inputs(x_b):
    """Batch prep (plain JAX): channels-major node features, padded to full grid steps."""
    B, N, C = x_b.shape
    pad = (-B) % GRAPHS_PER_STEP
    if pad:
        x_b = jnp.concatenate([x_b, jnp.zeros((pad, N, C), x_b.dtype)], axis=0)
    bp = B + pad
    nt = bp // GRAPHS_PER_STEP
    x_t = x_b.reshape(bp * N, C).T                                   # [C, bp*N]
    x_t = jnp.concatenate(
        [x_t, jnp.zeros((C_PAD - C, bp * N), x_b.dtype)], axis=0)    # pad channels to 8
    return x_t, nt


def gnn_lstm_forward_batched(a_hat, x_b, params):
    """a_hat: [N, N] normalized adjacency shared by the batch; x_b: [B, N, C] -> [B, N]."""
    B, N, _ = x_b.shape
    assert N == N_NODES and SLAB % N == 0
    x_t, nt = pack_inputs(x_b)
    a_bd = build_blockdiag_at(a_hat)
    wpack, bpack = pack_params(params)

    out = pl.pallas_call(
        gnn_lstm_kernel,
        out_shape=jax.ShapeDtypeStruct((nt, 1, G * SLAB), jnp.float32),
        grid_spec=pltpu.PrefetchScalarGridSpec(
            num_scalar_prefetch=0,
            grid=(nt,),
            in_specs=[
                pl.BlockSpec((SLAB, SLAB), lambda t: (0, 0)),        # A_hat^T block-diag (resident)
                pl.BlockSpec((C_PAD, G * SLAB), lambda t: (0, t)),   # X^T slabs (streamed)
                pl.BlockSpec((WPACK_ROWS, 32), lambda t: (0, 0)),    # packed weights (resident)
                pl.BlockSpec((BPACK_ROWS, SLAB), lambda t: (0, 0)),  # packed biases (resident)
            ],
            out_specs=pl.BlockSpec((1, 1, G * SLAB), lambda t: (t, 0, 0)),
        ),
        compiler_params=pltpu.CompilerParams(
            dimension_semantics=("parallel",)),
    )(a_bd, x_t, wpack, bpack)
    return out.reshape(-1, N)[:B]                   # [B, N], matches .squeeze() per graph


def gnn_lstm_forward(a_hat, x, params):
    """Single-graph convenience wrapper (original module semantics -> [N])."""
    return gnn_lstm_forward_batched(a_hat, x[None], params)[0]


def build_norm_adj(edge_index, num_nodes):
    """Dense normalized adjacency exactly like PyG gcn_norm (add self loops).
    Plain-JAX graph glue, done once per static graph."""
    src = edge_index[0]
    dst = edge_index[1]
    loop = jnp.arange(num_nodes, dtype=src.dtype)
    src = jnp.concatenate([src, loop])
    dst = jnp.concatenate([dst, loop])
    deg = jnp.zeros((num_nodes,), jnp.float32).at[dst].add(1.0)
    dinv = jnp.where(deg > 0, 1.0 / jnp.sqrt(deg), 0.0)
    norm = dinv[src] * dinv[dst]
    a = jnp.zeros((num_nodes, num_nodes), jnp.float32).at[dst, src].add(norm)
    return a


def init_params(key):
    ks = jax.random.split(key, 9)
    s = 0.1
    # GCNConv weights stored as [in, out] (== PyTorch [out, in] transposed).
    w1 = s * jax.random.normal(ks[0], (IN_CHANNELS, H1), jnp.float32)
    b1 = s * jax.random.normal(ks[1], (1, H1), jnp.float32)
    w2 = s * jax.random.normal(ks[2], (H1, H2), jnp.float32)
    b2 = s * jax.random.normal(ks[3], (1, H2), jnp.float32)
    # LSTM: W_ih stored as [input, 4*hidden] (PyTorch weight_ih_l0 transposed), gates i,f,g,o.
    wih = s * jax.random.normal(ks[4], (H2, 4 * HL), jnp.float32)
    bih = s * jax.random.normal(ks[5], (1, 4 * HL), jnp.float32)
    bhh = s * jax.random.normal(ks[6], (1, 4 * HL), jnp.float32)
    wout = s * jax.random.normal(ks[7], (HL, 1), jnp.float32)
    bout = s * jax.random.normal(ks[8], (1, 1), jnp.float32)
    return (w1, b1, w2, b2, wih, bih, bhh, wout, bout)


def reference_forward(a_hat, x_b, params):
    """Plain-JAX reference of the PyTorch forward (for correctness check)."""
    w1, b1, w2, b2, wih, bih, bhh, wout, bout = params

    def one(x):
        h1 = jax.nn.relu(a_hat @ (x @ w1) + b1)
        h2 = jax.nn.relu(a_hat @ (h1 @ w2) + b2)
        gates = h2 @ wih + bih + bhh
        i = jax.nn.sigmoid(gates[:, 0:HL])
        g = jnp.tanh(gates[:, 2 * HL:3 * HL])
        o = jax.nn.sigmoid(gates[:, 3 * HL:4 * HL])
        c = i * g
        h = o * jnp.tanh(c)
        return (h @ wout + bout)[:, 0]

    return jax.vmap(one)(x_b)


if __name__ == "__main__":
    key = jax.random.PRNGKey(0)
    k_x, k_p = jax.random.split(key)

    # 256 independent graphs of 16 nodes -> 4096 nodes -> grid of 4 fat steps
    # (64 graphs / 1024 nodes per step; >= 2 steps per TensorCore on v7x).
    B = 256
    x_b = jax.random.normal(k_x, (B, N_NODES, IN_CHANNELS), jnp.float32)

    # Synthetic static graph: undirected ring, shared by all graphs in the batch.
    src = jnp.arange(N_NODES, dtype=jnp.int32)
    dst = (src + 1) % N_NODES
    edge_index = jnp.stack([jnp.concatenate([src, dst]),
                            jnp.concatenate([dst, src])], axis=0)   # [2, 32]
    a_hat = build_norm_adj(edge_index, N_NODES)                     # built once (hoisted)

    params = init_params(k_p)

    fwd = jax.jit(gnn_lstm_forward_batched)
    out = fwd(a_hat, x_b, params)
    jax.block_until_ready(out)

    ref = reference_forward(a_hat, x_b, params)
    assert out.shape == (B, N_NODES)
    assert jnp.allclose(out, ref, atol=3e-3, rtol=3e-2), float(jnp.max(jnp.abs(out - ref)))
    print("KERNEL_OK")
</pallas_src>

<mosaic_0001>
module attributes {stable_mosaic.version = 11 : i64} {
  func.func @gnn_lstm_kernel(%arg0: i32, %arg1: memref<256x256xf32, #tpu.memory_space<vmem>>, %arg2: memref<8x1024xf32, #tpu.memory_space<vmem>>, %arg3: memref<72x32xf32, #tpu.memory_space<vmem>>, %arg4: memref<88x256xf32, #tpu.memory_space<vmem>>, %arg5: memref<1x1x1024xf32, #tpu.memory_space<vmem>>) attributes {dimension_semantics = [#tpu.dimension_semantics<parallel>], iteration_bounds = array<i64: 4>, scalar_prefetch = 0 : i64, scratch_operands = 0 : i64, tpu.core_type = #tpu.core_type<tc>, window_params = [{pipeline_mode = #tpu.pipeline_mode<synchronous>, transform_indices = @transform_0, window_bounds = array<i64: 256, 256>}, {transform_indices = @transform_1, window_bounds = array<i64: 8, 1024>}, {pipeline_mode = #tpu.pipeline_mode<synchronous>, transform_indices = @transform_2, window_bounds = array<i64: 72, 32>}, {pipeline_mode = #tpu.pipeline_mode<synchronous>, transform_indices = @transform_3, window_bounds = array<i64: 88, 256>}, {transform_indices = @transform_4, window_bounds = array<i64: 1, 1, 1024>}]} {
    %c0 = arith.constant 0 : index
    %c0_0 = arith.constant 0 : index
    %0 = vector.load %arg1[%c0, %c0_0] : memref<256x256xf32, #tpu.memory_space<vmem>>, vector<256x256xf32>
    %c0_1 = arith.constant 0 : index
    %c0_2 = arith.constant 0 : index
    %1 = vector.load %arg3[%c0_1, %c0_2] : memref<72x32xf32, #tpu.memory_space<vmem>>, vector<32x8xf32>
    %c32 = arith.constant 32 : index
    %c0_3 = arith.constant 0 : index
    %2 = vector.load %arg3[%c32, %c0_3] : memref<72x32xf32, #tpu.memory_space<vmem>>, vector<16x32xf32>
    %c48 = arith.constant 48 : index
    %c0_4 = arith.constant 0 : index
    %3 = vector.load %arg3[%c48, %c0_4] : memref<72x32xf32, #tpu.memory_space<vmem>>, vector<24x16xf32>
    %c0_5 = arith.constant 0 : index
    %c0_6 = arith.constant 0 : index
    %4 = vector.load %arg4[%c0_5, %c0_6] : memref<88x256xf32, #tpu.memory_space<vmem>>, vector<32x256xf32>
    %c32_7 = arith.constant 32 : index
    %c0_8 = arith.constant 0 : index
    %5 = vector.load %arg4[%c32_7, %c0_8] : memref<88x256xf32, #tpu.memory_space<vmem>>, vector<16x256xf32>
    %c48_9 = arith.constant 48 : index
    %c0_10 = arith.constant 0 : index
    %6 = vector.load %arg4[%c48_9, %c0_10] : memref<88x256xf32, #tpu.memory_space<vmem>>, vector<24x256xf32>
    %c72 = arith.constant 72 : index
    %c0_11 = arith.constant 0 : index
    %7 = vector.load %arg4[%c72, %c0_11] : memref<88x256xf32, #tpu.memory_space<vmem>>, vector<8x256xf32>
    %c80 = arith.constant 80 : index
    %c0_12 = arith.constant 0 : index
    %8 = vector.load %arg4[%c80, %c0_12] : memref<88x256xf32, #tpu.memory_space<vmem>>, vector<1x256xf32>
    %c0_13 = arith.constant 0 : index
    %c0_14 = arith.constant 0 : index
    %9 = vector.load %arg2[%c0_13, %c0_14] : memref<8x1024xf32, #tpu.memory_space<vmem>>, vector<8x256xf32>
    %cst = arith.constant dense<0.000000e+00> : vector<32x256xf32>
    %10 = tpu.matmul %1, %9, %cst {dimension_numbers = #tpu.dot_dimension_numbers<[1], [0], [0], [1], [0, 0, 1, 1], [], []>} : vector<32x8xf32>, vector<8x256xf32>, vector<32x256xf32> -> vector<32x256xf32>
    %cst_15 = arith.constant dense<0.000000e+00> : vector<32x256xf32>
    %11 = tpu.matmul %10, %0, %cst_15 {dimension_numbers = #tpu.dot_dimension_numbers<[1], [0], [0], [1], [0, 0, 1, 1], [], []>} : vector<32x256xf32>, vector<256x256xf32>, vector<32x256xf32> -> vector<32x256xf32>
    %12 = arith.addf %11, %4 : vector<32x256xf32>
    %cst_16 = arith.constant 0.000000e+00 : f32
    %13 = vector.broadcast %cst_16 : f32 to vector<32x256xf32>
    %14 = arith.maximumf %12, %13 : vector<32x256xf32>
    %cst_17 = arith.constant dense<0.000000e+00> : vector<16x256xf32>
    %15 = tpu.matmul %2, %14, %cst_17 {dimension_numbers = #tpu.dot_dimension_numbers<[1], [0], [0], [1], [0, 0, 1, 1], [], []>} : vector<16x32xf32>, vector<32x256xf32>, vector<16x256xf32> -> vector<16x256xf32>
    %cst_18 = arith.constant dense<0.000000e+00> : vector<16x256xf32>
    %16 = tpu.matmul %15, %0, %cst_18 {dimension_numbers = #tpu.dot_dimension_numbers<[1], [0], [0], [1], [0, 0, 1, 1], [], []>} : vector<16x256xf32>, vector<256x256xf32>, vector<16x256xf32> -> vector<16x256xf32>
    %17 = arith.addf %16, %5 : vector<16x256xf32>
    %cst_19 = arith.constant 0.000000e+00 : f32
    %18 = vector.broadcast %cst_19 : f32 to vector<16x256xf32>
    %19 = arith.maximumf %17, %18 : vector<16x256xf32>
    %cst_20 = arith.constant dense<0.000000e+00> : vector<24x256xf32>
    %20 = tpu.matmul %3, %19, %cst_20 {dimension_numbers = #tpu.dot_dimension_numbers<[1], [0], [0], [1], [0, 0, 1, 1], [], []>} : vector<24x16xf32>, vector<16x256xf32>, vector<24x256xf32> -> vector<24x256xf32>
    %21 = arith.addf %20, %6 : vector<24x256xf32>
    %22 = vector.extract_strided_slice %21 {offsets = [0, 0], sizes = [8, 256], strides = [1, 1]} : vector<24x256xf32> to vector<8x256xf32>
    %23 = arith.negf %22 : vector<8x256xf32>
    %24 = math.exp %23 : vector<8x256xf32>
    %cst_21 = arith.constant 1.000000e+00 : f32
    %25 = vector.broadcast %cst_21 : f32 to vector<8x256xf32>
    %26 = arith.addf %25, %24 : vector<8x256xf32>
    %27 = arith.divf %25, %26 : vector<8x256xf32>
    %28 = vector.extract_strided_slice %21 {offsets = [8, 0], sizes = [8, 256], strides = [1, 1]} : vector<24x256xf32> to vector<8x256xf32>
    %29 = math.tanh %28 : vector<8x256xf32>
    %30 = vector.extract_strided_slice %21 {offsets = [16, 0], sizes = [8, 256], strides = [1, 1]} : vector<24x256xf32> to vector<8x256xf32>
    %31 = arith.negf %30 : vector<8x256xf32>
    %32 = math.exp %31 : vector<8x256xf32>
    %cst_22 = arith.constant 1.000000e+00 : f32
    %33 = vector.broadcast %cst_22 : f32 to vector<8x256xf32>
    %34 = arith.addf %33, %32 : vector<8x256xf32>
    %35 = arith.divf %33, %34 : vector<8x256xf32>
    %36 = arith.mulf %27, %29 : vector<8x256xf32>
    %37 = math.tanh %36 : vector<8x256xf32>
    %38 = arith.mulf %35, %37 : vector<8x256xf32>
    %39 = arith.mulf %38, %7 : vector<8x256xf32>
    %cst_23 = arith.constant dense<0.000000e+00> : vector<256xf32>
    %40 = vector.multi_reduction <add>, %39, %cst_23 [0] : vector<8x256xf32> to vector<256xf32>
    %41 = vector.shape_cast %40 : vector<256xf32> to vector<1x256xf32>
    %42 = arith.addf %41, %8 : vector<1x256xf32>
    %c0_24 = arith.constant 0 : index
    %c0_25 = arith.constant 0 : index
    %c0_26 = arith.constant 0 : index
    %43 = vector.load %arg5[%c0_24, %c0_25, %c0_26] : memref<1x1x1024xf32, #tpu.memory_space<vmem>>, vector<1x1x256xf32>
    %44 = vector.shape_cast %43 : vector<1x1x256xf32> to vector<1x256xf32>
    %45 = vector.shape_cast %42 : vector<1x256xf32> to vector<1x1x256xf32>
    tpu.vector_store %arg5[%c0_24, %c0_25, %c0_26], %45 {strides = array<i32>} : memref<1x1x1024xf32, #tpu.memory_space<vmem>>, vector<1x1x256xf32>,
    %c0_27 = arith.constant 0 : index
    %c256 = arith.constant 256 : index
    %46 = vector.load %arg2[%c0_27, %c256] : memref<8x1024xf32, #tpu.memory_space<vmem>>, vector<8x256xf32>
    %cst_28 = arith.constant dense<0.000000e+00> : vector<32x256xf32>
    %47 = tpu.matmul %1, %46, %cst_28 {dimension_numbers = #tpu.dot_dimension_numbers<[1], [0], [0], [1], [0, 0, 1, 1], [], []>} : vector<32x8xf32>, vector<8x256xf32>, vector<32x256xf32> -> vector<32x256xf32>
    %cst_29 = arith.constant dense<0.000000e+00> : vector<32x256xf32>
    %48 = tpu.matmul %47, %0, %cst_29 {dimension_numbers = #tpu.dot_dimension_numbers<[1], [0], [0], [1], [0, 0, 1, 1], [], []>} : vector<32x256xf32>, vector<256x256xf32>, vector<32x256xf32> -> vector<32x256xf32>
    %49 = arith.addf %48, %4 : vector<32x256xf32>
    %cst_30 = arith.constant 0.000000e+00 : f32
    %50 = vector.broadcast %cst_30 : f32 to vector<32x256xf32>
    %51 = arith.maximumf %49, %50 : vector<32x256xf32>
    %cst_31 = arith.constant dense<0.000000e+00> : vector<16x256xf32>
    %52 = tpu.matmul %2, %51, %cst_31 {dimension_numbers = #tpu.dot_dimension_numbers<[1], [0], [0], [1], [0, 0, 1, 1], [], []>} : vector<16x32xf32>, vector<32x256xf32>, vector<16x256xf32> -> vector<16x256xf32>
    %cst_32 = arith.constant dense<0.000000e+00> : vector<16x256xf32>
    %53 = tpu.matmul %52, %0, %cst_32 {dimension_numbers = #tpu.dot_dimension_numbers<[1], [0], [0], [1], [0, 0, 1, 1], [], []>} : vector<16x256xf32>, vector<256x256xf32>, vector<16x256xf32> -> vector<16x256xf32>
    %54 = arith.addf %53, %5 : vector<16x256xf32>
    %cst_33 = arith.constant 0.000000e+00 : f32
    %55 = vector.broadcast %cst_33 : f32 to vector<16x256xf32>
    %56 = arith.maximumf %54, %55 : vector<16x256xf32>
    %cst_34 = arith.constant dense<0.000000e+00> : vector<24x256xf32>
    %57 = tpu.matmul %3, %56, %cst_34 {dimension_numbers = #tpu.dot_dimension_numbers<[1], [0], [0], [1], [0, 0, 1, 1], [], []>} : vector<24x16xf32>, vector<16x256xf32>, vector<24x256xf32> -> vector<24x256xf32>
    %58 = arith.addf %57, %6 : vector<24x256xf32>
    %59 = vector.extract_strided_slice %58 {offsets = [0, 0], sizes = [8, 256], strides = [1, 1]} : vector<24x256xf32> to vector<8x256xf32>
    %60 = arith.negf %59 : vector<8x256xf32>
    %61 = math.exp %60 : vector<8x256xf32>
    %cst_35 = arith.constant 1.000000e+00 : f32
    %62 = vector.broadcast %cst_35 : f32 to vector<8x256xf32>
    %63 = arith.addf %62, %61 : vector<8x256xf32>
    %64 = arith.divf %62, %63 : vector<8x256xf32>
    %65 = vector.extract_strided_slice %58 {offsets = [8, 0], sizes = [8, 256], strides = [1, 1]} : vector<24x256xf32> to vector<8x256xf32>
    %66 = math.tanh %65 : vector<8x256xf32>
    %67 = vector.extract_strided_slice %58 {offsets = [16, 0], sizes = [8, 256], strides = [1, 1]} : vector<24x256xf32> to vector<8x256xf32>
    %68 = arith.negf %67 : vector<8x256xf32>
    %69 = math.exp %68 : vector<8x256xf32>
    %cst_36 = arith.constant 1.000000e+00 : f32
    %70 = vector.broadcast %cst_36 : f32 to vector<8x256xf32>
    %71 = arith.addf %70, %69 : vector<8x256xf32>
    %72 = arith.divf %70, %71 : vector<8x256xf32>
    %73 = arith.mulf %64, %66 : vector<8x256xf32>
    %74 = math.tanh %73 : vector<8x256xf32>
    %75 = arith.mulf %72, %74 : vector<8x256xf32>
    %76 = arith.mulf %75, %7 : vector<8x256xf32>
    %cst_37 = arith.constant dense<0.000000e+00> : vector<256xf32>
    %77 = vector.multi_reduction <add>, %76, %cst_37 [0] : vector<8x256xf32> to vector<256xf32>
    %78 = vector.shape_cast %77 : vector<256xf32> to vector<1x256xf32>
    %79 = arith.addf %78, %8 : vector<1x256xf32>
    %c0_38 = arith.constant 0 : index
    %c0_39 = arith.constant 0 : index
    %c256_40 = arith.constant 256 : index
    %80 = vector.load %arg5[%c0_38, %c0_39, %c256_40] : memref<1x1x1024xf32, #tpu.memory_space<vmem>>, vector<1x1x256xf32>
    %81 = vector.shape_cast %80 : vector<1x1x256xf32> to vector<1x256xf32>
    %82 = vector.shape_cast %79 : vector<1x256xf32> to vector<1x1x256xf32>
    tpu.vector_store %arg5[%c0_38, %c0_39, %c256_40], %82 {strides = array<i32>} : memref<1x1x1024xf32, #tpu.memory_space<vmem>>, vector<1x1x256xf32>,
    %c0_41 = arith.constant 0 : index
    %c512 = arith.constant 512 : index
    %83 = vector.load %arg2[%c0_41, %c512] : memref<8x1024xf32, #tpu.memory_space<vmem>>, vector<8x256xf32>
    %cst_42 = arith.constant dense<0.000000e+00> : vector<32x256xf32>
    %84 = tpu.matmul %1, %83, %cst_42 {dimension_numbers = #tpu.dot_dimension_numbers<[1], [0], [0], [1], [0, 0, 1, 1], [], []>} : vector<32x8xf32>, vector<8x256xf32>, vector<32x256xf32> -> vector<32x256xf32>
    %cst_43 = arith.constant dense<0.000000e+00> : vector<32x256xf32>
    %85 = tpu.matmul %84, %0, %cst_43 {dimension_numbers = #tpu.dot_dimension_numbers<[1], [0], [0], [1], [0, 0, 1, 1], [], []>} : vector<32x256xf32>, vector<256x256xf32>, vector<32x256xf32> -> vector<32x256xf32>
    %86 = arith.addf %85, %4 : vector<32x256xf32>
    %cst_44 = arith.constant 0.000000e+00 : f32
    %87 = vector.broadcast %cst_44 : f32 to vector<32x256xf32>
    %88 = arith.maximumf %86, %87 : vector<32x256xf32>
    %cst_45 = arith.constant dense<0.000000e+00> : vector<16x256xf32>
    %89 = tpu.matmul %2, %88, %cst_45 {dimension_numbers = #tpu.dot_dimension_numbers<[1], [0], [0], [1], [0, 0, 1, 1], [], []>} : vector<16x32xf32>, vector<32x256xf32>, vector<16x256xf32> -> vector<16x256xf32>
    %cst_46 = arith.constant dense<0.000000e+00> : vector<16x256xf32>
    %90 = tpu.matmul %89, %0, %cst_46 {dimension_numbers = #tpu.dot_dimension_numbers<[1], [0], [0], [1], [0, 0, 1, 1], [], []>} : vector<16x256xf32>, vector<256x256xf32>, vector<16x256xf32> -> vector<16x256xf32>
    %91 = arith.addf %90, %5 : vector<16x256xf32>
    %cst_47 = arith.constant 0.000000e+00 : f32
    %92 = vector.broadcast %cst_47 : f32 to vector<16x256xf32>
    %93 = arith.maximumf %91, %92 : vector<16x256xf32>
    %cst_48 = arith.constant dense<0.000000e+00> : vector<24x256xf32>
    %94 = tpu.matmul %3, %93, %cst_48 {dimension_numbers = #tpu.dot_dimension_numbers<[1], [0], [0], [1], [0, 0, 1, 1], [], []>} : vector<24x16xf32>, vector<16x256xf32>, vector<24x256xf32> -> vector<24x256xf32>
    %95 = arith.addf %94, %6 : vector<24x256xf32>
    %96 = vector.extract_strided_slice %95 {offsets = [0, 0], sizes = [8, 256], strides = [1, 1]} : vector<24x256xf32> to vector<8x256xf32>
    %97 = arith.negf %96 : vector<8x256xf32>
    %98 = math.exp %97 : vector<8x256xf32>
    %cst_49 = arith.constant 1.000000e+00 : f32
    %99 = vector.broadcast %cst_49 : f32 to vector<8x256xf32>
    %100 = arith.addf %99, %98 : vector<8x256xf32>
    %101 = arith.divf %99, %100 : vector<8x256xf32>
    %102 = vector.extract_strided_slice %95 {offsets = [8, 0], sizes = [8, 256], strides = [1, 1]} : vector<24x256xf32> to vector<8x256xf32>
    %103 = math.tanh %102 : vector<8x256xf32>
    %104 = vector.extract_strided_slice %95 {offsets = [16, 0], sizes = [8, 256], strides = [1, 1]} : vector<24x256xf32> to vector<8x256xf32>
    %105 = arith.negf %104 : vector<8x256xf32>
    %106 = math.exp %105 : vector<8x256xf32>
    %cst_50 = arith.constant 1.000000e+00 : f32
    %107 = vector.broadcast %cst_50 : f32 to vector<8x256xf32>
    %108 = arith.addf %107, %106 : vector<8x256xf32>
    %109 = arith.divf %107, %108 : vector<8x256xf32>
    %110 = arith.mulf %101, %103 : vector<8x256xf32>
    %111 = math.tanh %110 : vector<8x256xf32>
    %112 = arith.mulf %109, %111 : vector<8x256xf32>
    %113 = arith.mulf %112, %7 : vector<8x256xf32>
    %cst_51 = arith.constant dense<0.000000e+00> : vector<256xf32>
    %114 = vector.multi_reduction <add>, %113, %cst_51 [0] : vector<8x256xf32> to vector<256xf32>
    %115 = vector.shape_cast %114 : vector<256xf32> to vector<1x256xf32>
    %116 = arith.addf %115, %8 : vector<1x256xf32>
    %c0_52 = arith.constant 0 : index
    %c0_53 = arith.constant 0 : index
    %c512_54 = arith.constant 512 : index
    %117 = vector.load %arg5[%c0_52, %c0_53, %c512_54] : memref<1x1x1024xf32, #tpu.memory_space<vmem>>, vector<1x1x256xf32>
    %118 = vector.shape_cast %117 : vector<1x1x256xf32> to vector<1x256xf32>
    %119 = vector.shape_cast %116 : vector<1x256xf32> to vector<1x1x256xf32>
    tpu.vector_store %arg5[%c0_52, %c0_53, %c512_54], %119 {strides = array<i32>} : memref<1x1x1024xf32, #tpu.memory_space<vmem>>, vector<1x1x256xf32>,
    %c0_55 = arith.constant 0 : index
    %c768 = arith.constant 768 : index
    %120 = vector.load %arg2[%c0_55, %c768] : memref<8x1024xf32, #tpu.memory_space<vmem>>, vector<8x256xf32>
    %cst_56 = arith.constant dense<0.000000e+00> : vector<32x256xf32>
    %121 = tpu.matmul %1, %120, %cst_56 {dimension_numbers = #tpu.dot_dimension_numbers<[1], [0], [0], [1], [0, 0, 1, 1], [], []>} : vector<32x8xf32>, vector<8x256xf32>, vector<32x256xf32> -> vector<32x256xf32>
    %cst_57 = arith.constant dense<0.000000e+00> : vector<32x256xf32>
    %122 = tpu.matmul %121, %0, %cst_57 {dimension_numbers = #tpu.dot_dimension_numbers<[1], [0], [0], [1], [0, 0, 1, 1], [], []>} : vector<32x256xf32>, vector<256x256xf32>, vector<32x256xf32> -> vector<32x256xf32>
    %123 = arith.addf %122, %4 : vector<32x256xf32>
    %cst_58 = arith.constant 0.000000e+00 : f32
    %124 = vector.broadcast %cst_58 : f32 to vector<32x256xf32>
    %125 = arith.maximumf %123, %124 : vector<32x256xf32>
    %cst_59 = arith.constant dense<0.000000e+00> : vector<16x256xf32>
    %126 = tpu.matmul %2, %125, %cst_59 {dimension_numbers = #tpu.dot_dimension_numbers<[1], [0], [0], [1], [0, 0, 1, 1], [], []>} : vector<16x32xf32>, vector<32x256xf32>, vector<16x256xf32> -> vector<16x256xf32>
    %cst_60 = arith.constant dense<0.000000e+00> : vector<16x256xf32>
    %127 = tpu.matmul %126, %0, %cst_60 {dimension_numbers = #tpu.dot_dimension_numbers<[1], [0], [0], [1], [0, 0, 1, 1], [], []>} : vector<16x256xf32>, vector<256x256xf32>, vector<16x256xf32> -> vector<16x256xf32>
    %128 = arith.addf %127, %5 : vector<16x256xf32>
    %cst_61 = arith.constant 0.000000e+00 : f32
    %129 = vector.broadcast %cst_61 : f32 to vector<16x256xf32>
    %130 = arith.maximumf %128, %129 : vector<16x256xf32>
    %cst_62 = arith.constant dense<0.000000e+00> : vector<24x256xf32>
    %131 = tpu.matmul %3, %130, %cst_62 {dimension_numbers = #tpu.dot_dimension_numbers<[1], [0], [0], [1], [0, 0, 1, 1], [], []>} : vector<24x16xf32>, vector<16x256xf32>, vector<24x256xf32> -> vector<24x256xf32>
    %132 = arith.addf %131, %6 : vector<24x256xf32>
    %133 = vector.extract_strided_slice %132 {offsets = [0, 0], sizes = [8, 256], strides = [1, 1]} : vector<24x256xf32> to vector<8x256xf32>
    %134 = arith.negf %133 : vector<8x256xf32>
    %135 = math.exp %134 : vector<8x256xf32>
    %cst_63 = arith.constant 1.000000e+00 : f32
    %136 = vector.broadcast %cst_63 : f32 to vector<8x256xf32>
    %137 = arith.addf %136, %135 : vector<8x256xf32>
    %138 = arith.divf %136, %137 : vector<8x256xf32>
    %139 = vector.extract_strided_slice %132 {offsets = [8, 0], sizes = [8, 256], strides = [1, 1]} : vector<24x256xf32> to vector<8x256xf32>
    %140 = math.tanh %139 : vector<8x256xf32>
    %141 = vector.extract_strided_slice %132 {offsets = [16, 0], sizes = [8, 256], strides = [1, 1]} : vector<24x256xf32> to vector<8x256xf32>
    %142 = arith.negf %141 : vector<8x256xf32>
    %143 = math.exp %142 : vector<8x256xf32>
    %cst_64 = arith.constant 1.000000e+00 : f32
    %144 = vector.broadcast %cst_64 : f32 to vector<8x256xf32>
    %145 = arith.addf %144, %143 : vector<8x256xf32>
    %146 = arith.divf %144, %145 : vector<8x256xf32>
    %147 = arith.mulf %138, %140 : vector<8x256xf32>
    %148 = math.tanh %147 : vector<8x256xf32>
    %149 = arith.mulf %146, %148 : vector<8x256xf32>
    %150 = arith.mulf %149, %7 : vector<8x256xf32>
    %cst_65 = arith.constant dense<0.000000e+00> : vector<256xf32>
    %151 = vector.multi_reduction <add>, %150, %cst_65 [0] : vector<8x256xf32> to vector<256xf32>
    %152 = vector.shape_cast %151 : vector<256xf32> to vector<1x256xf32>
    %153 = arith.addf %152, %8 : vector<1x256xf32>
    %c0_66 = arith.constant 0 : index
    %c0_67 = arith.constant 0 : index
    %c768_68 = arith.constant 768 : index
    %154 = vector.load %arg5[%c0_66, %c0_67, %c768_68] : memref<1x1x1024xf32, #tpu.memory_space<vmem>>, vector<1x1x256xf32>
    %155 = vector.shape_cast %154 : vector<1x1x256xf32> to vector<1x256xf32>
    %156 = vector.shape_cast %153 : vector<1x256xf32> to vector<1x1x256xf32>
    tpu.vector_store %arg5[%c0_66, %c0_67, %c768_68], %156 {strides = array<i32>} : memref<1x1x1024xf32, #tpu.memory_space<vmem>>, vector<1x1x256xf32>,
    return
  }
  func.func @transform_0(%arg0: i32) -> (i32, i32) {
    %c0_i32 = arith.constant 0 : i32
    %c0_i32_0 = arith.constant 0 : i32
    %c0_i32_1 = arith.constant 0 : i32
    return %c0_i32, %c0_i32_0 : i32, i32
  }
  func.func @transform_1(%arg0: i32) -> (i32, i32) {
    %c0_i32 = arith.constant 0 : i32
    %c0_i32_0 = arith.constant 0 : i32
    return %c0_i32, %arg0 : i32, i32
  }
  func.func @transform_2(%arg0: i32) -> (i32, i32) {
    %c0_i32 = arith.constant 0 : i32
    %c0_i32_0 = arith.constant 0 : i32
    %c0_i32_1 = arith.constant 0 : i32
    return %c0_i32, %c0_i32_0 : i32, i32
  }
  func.func @transform_3(%arg0: i32) -> (i32, i32) {
    %c0_i32 = arith.constant 0 : i32
    %c0_i32_0 = arith.constant 0 : i32
    %c0_i32_1 = arith.constant 0 : i32
    return %c0_i32, %c0_i32_0 : i32, i32
  }
  func.func @transform_4(%arg0: i32) -> (i32, i32, i32) {
    %c0_i32 = arith.constant 0 : i32
    %c0_i32_0 = arith.constant 0 : i32
    %c0_i32_1 = arith.constant 0 : i32
    return %arg0, %c0_i32, %c0_i32_0 : i32, i32, i32
  }
}

</mosaic_0001>

<bundles_post_ra>
// kernel: gnn_lstm_forward_batched.1
= control target key start
LH: loop header
LB: loop body
LE: loop exit
PB: predicated region body
PF: predicated region fallthrough
CT: control target
= control target key end

     0   :  { %s3168_s15 = smov 0   ;;  %s4158_s0 = inlined_call_operand.vmem [shape: f32[256,256], index: 0, kind: input, shape index: {}]   ;;  %s4159_s1 = inlined_call_operand.vmem [shape: f32[8,4096], index: 1, kind: input, shape index: {}]   ;;  %s4160_s2 = inlined_call_operand.vmem [shape: f32[72,32], index: 2, kind: input, shape index: {}]   ;;  %s4161_s3 = inlined_call_operand.vmem [shape: f32[88,256], index: 3, kind: input, shape index: {}]   ;;  %s4162_s4 = inlined_call_operand.vmem [shape: f32[4,1,1024], index: 4, kind: output, shape index: {}]  }
   0x1 LB: > { %s3174_s16 = sadd.s32 4294967295, %s3139_s15   ;;  %p2379_p0 = scmp.ge.s32.totalorder %s3139_s15, 1  ;;  %s3139_s15 = sphi %s3168_s15, %s14_s15  }
   0x2   : > { %p163_p1 = scmp.lt.s32.totalorder %s3139_s15, 5 }
   0x4   : > { %p164_p2 = pnand %p2379_p0, %p163_p1 }
   0x6   : > { %167 = sbr.rel (%p164_p2) target bundleno = 3573 (0xdf5), region = 36 }
   0xd   : > { %s2380_s17 = sshll.u32 %s3174_s16, 3  ;;  %v4163_v0 = vmov 0.0   ;;  %v199_v1 = vld [vmem:[%s4158_s0 + $0x8] sm:$0xff]  ;;  %v201_v2 = vld [vmem:[%s4158_s0 + $0x18] sm:$0xff]  ;;  %v198_v4 = vld [vmem:[%s4158_s0] sm:$0xff]  ;;  %vm295_vm0 = vcmask 64512  }
   0xe   : > { %p189_p3 = scmp.lt.s32.totalorder %s2380_s17, 31  ;;  %372 = vmatprep.mubr.f32.mxu0 %v4163_v0  ;;  %v3186_v3 = vpack.c.bf16 %v201_v2, %v199_v1  ;;  %v200_v5 = vld [vmem:[%s4158_s0 + $0x10] sm:$0xff]  ;;  %v203_v6 = vld [vmem:[%s4158_s0 + $0x28] sm:$0xff]  ;;  %v205_v8 = vld [vmem:[%s4158_s0 + $0x38] sm:$0xff]  ;;  %vm494_vm1 = vcmask 261120   ;;  %vm659_vm2 = vcmask 130048  }
   0xf   : > { %v3197_v7 = vpack.c.bf16 %v200_v5, %v198_v4  ;;  %v202_v9 = vld [vmem:[%s4158_s0 + $0x20] sm:$0xff]  ;;  %v204_v10 = vld [vmem:[%s4158_s0 + $0x30] sm:$0xff]  ;;  %v3209_v11 = vpack.c.bf16 %v205_v8, %v203_v6  ;;  %v207_v12 = vld [vmem:[%s4158_s0 + $0x48] sm:$0xff]  ;;  %p194_p4 = scmp.lt.s32.totalorder %s3174_s16, 3 }
  0x10   : > { %s4273_s17 = smov (!%p189_p3, %s2380_s17), 31  ;;  %2439 = vmatprep.subr.bf16.mxu1 %v3186_v3  ;;  %v209_v13 = vld [vmem:[%s4158_s0 + $0x58] sm:$0xff]  ;;  %v3220_v14 = vld [vmem:[%s4160_s2] sm:$0xff]  ;;  %v3223_v15 = vpack.c.bf16 %v204_v10, %v202_v9  ;;  %v208_v18 = vld [vmem:[%s4158_s0 + $0x50] sm:$0xff] }
  0x11   : > { %s2381_s12 = sshll.u32 %s4273_s17, 3  ;;  %2441 = vmatpush1.bf16.msra.mxu1 %v3197_v7  ;;  %v3231_v16 = vpack.c.bf16 %v209_v13, %v207_v12  ;;  %v206_v17 = vld [vmem:[%s4158_s0 + $0x40] sm:$0xff]  ;;  %v211_v19 = vld [vmem:[%s4158_s0 + $0x68] sm:$0xff]  ;;  %v213_v22 = vld [vmem:[%s4158_s0 + $0x78] sm:$0xff]  ;;  %s4275_s16 = smov (!%p194_p4, %s3174_s16), 3 }
  0x12   : > { %s3228_s20 = scalar_lea.vmem %s4159_s1, %s2381_s12  ;;  %2443 = vmatprep.subr.bf16.mxu1 %v3209_v11  ;;  %v3248_v23 = vpack.c.bf16 %v208_v18, %v206_v17  ;;  %v3253_v24 = vpack.c.bf16 %v213_v22, %v211_v19  ;;  %v210_v25 = vld [vmem:[%s4158_s0 + $0x60] sm:$0xff]  ;;  %v212_v26 = vld [vmem:[%s4158_s0 + $0x70] sm:$0xff]  ;;  %v3265_v27 = vld [vmem:[%s4160_s2 + $0x8] sm:$0xff]  ;;  %s2382_s25 = sshll.u32 %s4275_s16, 3 }
  0x13   : > { %v294_v20 = vld [vmem:[%s3228_s20 + $0x8] sm:$0xff]  ;;  %v293_v21 = vld [vmem:[%s3228_s20] sm:$0xff]  ;;  %v217_v29 = vld [vmem:[%s4158_s0 + $0x98] sm:$0xff]  ;;  %v3274_v30 = vpack.c.bf16 %v212_v26, %v210_v25  ;;  %s3763_s28 = scalar_lea.vmem %s4162_s4, %s2382_s25 }
  0x14   : > { %308 = vmatprep.subr.mxu0 %v294_v20  ;;  %v215_v28 = vld [vmem:[%s4158_s0 + $0x88] sm:$0xff]  ;;  %v214_v32 = vld [vmem:[%s4158_s0 + $0x80] sm:$0xff]  ;;  %v216_v33 = vld [vmem:[%s4158_s0 + $0x90] sm:$0xff] }
  0x15   : > { %309 = vmatpush1.msra.mxu0 %v293_v21  ;;  %2445 = vmatpush1.bf16.msra.mxu1 %v3223_v15  ;;  %v3279_v31 = vpack.c.bf16 %v217_v29, %v215_v28  ;;  %v3291_v34 = vld [vmem:[%s4160_s2 + $0x10] sm:$0xff]  ;;  %v219_v35 = vld [vmem:[%s4158_s0 + $0xa8] sm:$0xff]  ;;  %v221_v36 = vld [vmem:[%s4158_s0 + $0xb8] sm:$0xff]  ;;  %v3300_v37 = vpack.c.bf16 %v216_v33, %v214_v32 }
  0x16   : > { %2384 = vmatmul.mubr.msk.f32.vlgmr.msra.gmra.mrb[0].mxu0 %vm295_vm0, %v3220_v14  ;;  %2447 = vmatprep.subr.bf16.mxu1 %v3231_v16  ;;  %v3305_v38 = vpack.c.bf16 %v221_v36, %v219_v35  ;;  %v218_v39 = vld [vmem:[%s4158_s0 + $0xa0] sm:$0xff]  ;;  %v220_v40 = vld [vmem:[%s4158_s0 + $0xb0] sm:$0xff]  ;;  %v3317_v41 = vld [vmem:[%s4160_s2 + $0x18] sm:$0xff] }
  0x17   : > { %378 = vmatprep.mubr.f32.mxu0 %v4163_v0  ;;  %v223_v42 = vld [vmem:[%s4158_s0 + $0xc8] sm:$0xff]  ;;  %v225_v43 = vld [vmem:[%s4158_s0 + $0xd8] sm:$0xff]  ;;  %v3326_v44 = vpack.c.bf16 %v220_v40, %v218_v39  ;;  %v222_v46 = vld [vmem:[%s4158_s0 + $0xc0] sm:$0xff] }
  0x18   : > { %v3331_v45 = vpack.c.bf16 %v225_v43, %v223_v42  ;;  %v224_v47 = vld [vmem:[%s4158_s0 + $0xd0] sm:$0xff]  ;;  %v227_v48 = vld [vmem:[%s4158_s0 + $0xe8] sm:$0xff]  ;;  %v229_v49 = vld [vmem:[%s4158_s0 + $0xf8] sm:$0xff] }
  0x19   : > { %2449 = vmatpush1.bf16.msra.mxu1 %v3248_v23  ;;  %v3347_v50 = vpack.c.bf16 %v224_v47, %v222_v46  ;;  %v3350_v51 = vpack.c.bf16 %v229_v49, %v227_v48  ;;  %v226_v52 = vld [vmem:[%s4158_s0 + $0xe0] sm:$0xff]  ;;  %v228_v53 = vld [vmem:[%s4158_s0 + $0xf0] sm:$0xff]  ;;  %v231_v54 = vld [vmem:[%s4158_s0 + $0x108] sm:$0xff] }
  0x1a   : > { %2385 = vmatmul.mubr.msk.f32.gmra.mrb[2].mxu0 %vm295_vm0, %v3265_v27  ;;  %2451 = vmatprep.subr.bf16.mxu1 %v3253_v24  ;;  %v233_v55 = vld [vmem:[%s4158_s0 + $0x118] sm:$0xff]  ;;  %v3365_v56 = vpack.c.bf16 %v228_v53, %v226_v52  ;;  %v230_v58 = vld [vmem:[%s4158_s0 + $0x100] sm:$0xff]  ;;  %v232_v59 = vld [vmem:[%s4158_s0 + $0x110] sm:$0xff] }
  0x1b   : > { %384 = vmatprep.mubr.f32.mxu0 %v4163_v0  ;;  %v3368_v57 = vpack.c.bf16 %v233_v55, %v231_v54  ;;  %v235_v60 = vld [vmem:[%s4158_s0 + $0x128] sm:$0xff]  ;;  %v237_v61 = vld [vmem:[%s4158_s0 + $0x138] sm:$0xff]  ;;  %v3383_v62 = vpack.c.bf16 %v232_v59, %v230_v58  ;;  %v234_v1 = vld [vmem:[%s4158_s0 + $0x120] sm:$0xff] }
  0x1c   : > { %v3386_v63 = vpack.c.bf16 %v237_v61, %v235_v60  ;;  %v236_v2 = vld [vmem:[%s4158_s0 + $0x130] sm:$0xff]  ;;  %v239_v4 = vld [vmem:[%s4158_s0 + $0x148] sm:$0xff]  ;;  %v241_v5 = vld [vmem:[%s4158_s0 + $0x158] sm:$0xff] }
  0x1d   : > { %2453 = vmatpush1.bf16.msra.mxu1 %v3274_v30  ;;  %v3401_v6 = vpack.c.bf16 %v236_v2, %v234_v1  ;;  %v3404_v8 = vpack.c.bf16 %v241_v5, %v239_v4  ;;  %v238_v9 = vld [vmem:[%s4158_s0 + $0x140] sm:$0xff]  ;;  %v240_v10 = vld [vmem:[%s4158_s0 + $0x150] sm:$0xff]  ;;  %v243_v12 = vld [vmem:[%s4158_s0 + $0x168] sm:$0xff] }
  0x1e   : > { %2386 = vmatmul.mubr.msk.f32.gmra.mrb[4].mxu0 %vm295_vm0, %v3291_v34  ;;  %2455 = vmatprep.subr.bf16.mxu1 %v3279_v31  ;;  %v245_v13 = vld [vmem:[%s4158_s0 + $0x178] sm:$0xff]  ;;  %v3419_v17 = vpack.c.bf16 %v240_v10, %v238_v9  ;;  %v242_v19 = vld [vmem:[%s4158_s0 + $0x160] sm:$0xff]  ;;  %v244_v20 = vld [vmem:[%s4158_s0 + $0x170] sm:$0xff] }
  0x1f   : > { %390 = vmatprep.mubr.f32.mxu0 %v4163_v0  ;;  %v3422_v18 = vpack.c.bf16 %v245_v13, %v243_v12  ;;  %v247_v21 = vld [vmem:[%s4158_s0 + $0x188] sm:$0xff]  ;;  %v249_v22 = vld [vmem:[%s4158_s0 + $0x198] sm:$0xff]  ;;  %v3437_v25 = vpack.c.bf16 %v244_v20, %v242_v19  ;;  %v246_v28 = vld [vmem:[%s4158_s0 + $0x180] sm:$0xff] }
  0x20   : > { %v3440_v26 = vpack.c.bf16 %v249_v22, %v247_v21  ;;  %v248_v29 = vld [vmem:[%s4158_s0 + $0x190] sm:$0xff]  ;;  %v251_v32 = vld [vmem:[%s4158_s0 + $0x1a8] sm:$0xff]  ;;  %v253_v33 = vld [vmem:[%s4158_s0 + $0x1b8] sm:$0xff] }
  0x21   : > { %2457 = vmatpush1.bf16.msra.mxu1 %v3300_v37  ;;  %v3455_v35 = vpack.c.bf16 %v248_v29, %v246_v28  ;;  %v3458_v36 = vpack.c.bf16 %v253_v33, %v251_v32  ;;  %v250_v39 = vld [vmem:[%s4158_s0 + $0x1a0] sm:$0xff]  ;;  %v252_v40 = vld [vmem:[%s4158_s0 + $0x1b0] sm:$0xff]  ;;  %v255_v42 = vld [vmem:[%s4158_s0 + $0x1c8] sm:$0xff] }
  0x22   : > { %2387 = vmatmul.mubr.msk.f32.gmra.mrb[6].mxu0 %vm295_vm0, %v3317_v41  ;;  %2459 = vmatprep.subr.bf16.mxu1 %v3305_v38  ;;  %v257_v43 = vld [vmem:[%s4158_s0 + $0x1d8] sm:$0xff]  ;;  %v3473_v46 = vpack.c.bf16 %v252_v40, %v250_v39  ;;  %v254_v48 = vld [vmem:[%s4158_s0 + $0x1c0] sm:$0xff]  ;;  %v256_v49 = vld [vmem:[%s4158_s0 + $0x1d0] sm:$0xff] }
  0x23   : > { %565 = vmatprep.mubr.f32.mxu0 %v4163_v0  ;;  %v3476_v47 = vpack.c.bf16 %v257_v43, %v255_v42  ;;  %v259_v52 = vld [vmem:[%s4158_s0 + $0x1e8] sm:$0xff]  ;;  %v261_v53 = vld [vmem:[%s4158_s0 + $0x1f8] sm:$0xff]  ;;  %v3491_v54 = vpack.c.bf16 %v256_v49, %v254_v48  ;;  %v258_v58 = vld [vmem:[%s4158_s0 + $0x1e0] sm:$0xff] }
  0x24   : > { %v3494_v55 = vpack.c.bf16 %v261_v53, %v259_v52  ;;  %v260_v59 = vld [vmem:[%s4158_s0 + $0x1f0] sm:$0xff]  ;;  %v3511_v13 = vld [vmem:[%s4161_s3] sm:$0xff]  ;;  %v3516_v20 = vld [vmem:[%s4161_s3 + $0x8] sm:$0xff] }
  0x25   : > { %2461 = vmatpush1.bf16.msra.mxu1 %v3326_v44  ;;  %4208 = vst [vmem:[#allocation2_spill] sm:$0xff] %v3476_v47  ;;  %4209 = vst [vmem:[#allocation3_spill] sm:$0xff] %v3491_v54  ;;  %v3504_v60 = vpack.c.bf16 %v260_v59, %v258_v58  ;;  %v3521_v22 = vld [vmem:[%s4161_s3 + $0x10] sm:$0xff]  ;;  %v3527_v29 = vld [vmem:[%s4161_s3 + $0x18] sm:$0xff] }
  0x26   : > { %2463 = vmatprep.subr.bf16.mxu1 %v3331_v45  ;;  %4210 = vst [vmem:[#allocation4_spill] sm:$0xff] %v3494_v55  ;;  %4212 = vst [vmem:[#allocation6_spill] sm:$0xff] %v3527_v29  ;;  %v3535_v53 = vld [vmem:[%s4161_s3 + $0x20] sm:$0xff] }
  0x27   : > { %4211 = vst [vmem:[#allocation5_spill] sm:$0xff] %v3504_v60 }
  0x29   : > { %2465 = vmatpush1.bf16.msra.mxu1 %v3347_v50 }
  0x2a   : > { %2467 = vmatprep.subr.bf16.mxu1 %v3350_v51 }
  0x2d   : > { %2469 = vmatpush1.bf16.msra.mxu1 %v3365_v56 }
  0x2e   : > { %2471 = vmatprep.subr.bf16.mxu1 %v3368_v57 }
  0x31   : > { %2473 = vmatpush1.bf16.msra.mxu1 %v3383_v62 }
  0x32   : > { %2475 = vmatprep.subr.bf16.mxu1 %v3386_v63 }
  0x35   : > { %2477 = vmatpush1.bf16.msra.mxu1 %v3401_v6 }
  0x36   : > { %2479 = vmatprep.subr.bf16.mxu1 %v3404_v8 }
  0x39   : > { %2481 = vmatpush1.bf16.msra.mxu1 %v3419_v17 }
  0x3a   : > { %2483 = vmatprep.subr.bf16.mxu1 %v3422_v18 }
  0x3d   : > { %2485 = vmatpush1.bf16.msra.mxu1 %v3437_v25 }
  0x3e   : > { %2487 = vmatprep.subr.bf16.mxu1 %v3440_v26 }
  0x41   : > { %2489 = vmatpush1.bf16.msra.mxu1 %v3455_v35 }
  0x42   : > { %2491 = vmatprep.subr.bf16.mxu1 %v3458_v36 }
  0x45   : > { %2493 = vmatpush1.bf16.msra.mxu1 %v3473_v46 }
  0x46   : > { %2495 = vmatprep.subr.bf16.mxu1 %v3476_v47 }
  0x49   : > { %2497 = vmatpush1.bf16.msra.mxu1 %v3491_v54 }
  0x4a   : > { %2499 = vmatprep.subr.bf16.mxu1 %v3494_v55 }
  0x4d   : > { %2501 = vmatpush1.bf16.msra.mxu1 %v3504_v60 }
  0xe9   : > { %v374_v61 = vpop.f32.mrb[0].mxu0 }
  0xea   : > { %v376_v1 = vpop.f32.mrb[1].mxu0 }
  0xeb   : > { %461 = vmatprep.mubr.f32.mxu1 %v376_v1 }
  0xec   : > { %462 = vmatmul.mubr.f32.vlgmr.msra.gmra.mrb[0].mxu1 %v374_v61  ;;  %v3540_v61 = vld [vmem:[%s4161_s3 + $0x28] sm:$0xff] }
  0xed   : > { %v380_v2 = vpop.f32.mrb[2].mxu0 }
  0xee   : > { %v382_v4 = vpop.f32.mrb[3].mxu0 }
  0xef   : > { %467 = vmatprep.mubr.f32.mxu1 %v382_v4  ;;  %v3545_v4 = vld [vmem:[%s4161_s3 + $0x30] sm:$0xff] }
  0xf0   : > { %468 = vmatmul.mubr.f32.gmra.mrb[2].mxu1 %v380_v2 }
  0xf1   : > { %v386_v5 = vpop.f32.mrb[4].mxu0 }
  0xf2   : > { %v388_v9 = vpop.f32.mrb[5].mxu0 }
  0xf3   : > { %473 = vmatprep.mubr.f32.mxu1 %v388_v9  ;;  %v3551_v9 = vld [vmem:[%s4161_s3 + $0x38] sm:$0xff] }
  0xf4   : > { %474 = vmatmul.mubr.f32.gmra.mrb[4].mxu1 %v386_v5 }
  0xf5   : > { %v392_v10 = vpop.f32.mrb[6].mxu0 }
  0xf6   : > { %v394_v12 = vpop.f32.mrb[7].mxu0 }
  0xf7   : > { %479 = vmatprep.mubr.f32.mxu1 %v394_v12 }
  0xf8   : > { %480 = vmatmul.mubr.f32.gmra.mrb[6].mxu1 %v392_v10 }
  0xf9   : > { %733 = vmatprep.mubr.f32.mxu1 %v4163_v0 }
 0x1bf   : > { %v463_v19 = vpop.f32.mrb[0].mxu1 }
 0x1c0   : > { %v465_v21 = vpop.f32.mrb[1].mxu1  ;;  %v464_v28 = vadd.f32 %v463_v19, %v3511_v13 }
 0x1c1   : > { %v466_v32 = vadd.f32 %v465_v21, %v3516_v20 }
 0x1c2   : > { %v486_v43 = vmax.f32 %v464_v28, 0.0 }
 0x1c3   : > { %v469_v33 = vpop.f32.mrb[2].mxu1  ;;  %v487_v49 = vmax.f32 %v466_v32, 0.0 }
 0x1c4   : > { %v470_v39 = vadd.f32 %v469_v33, %v3521_v22  ;;  %v471_v40 = vpop.f32.mrb[3].mxu1 }
 0x1c5   : > { %v472_v42 = vadd.f32 %v471_v40, %v3527_v29 }
 0x1c6   : > { %v488_v48 = vmax.f32 %v470_v39, 0.0 }
 0x1c7   : > { %v489_v52 = vmax.f32 %v472_v42, 0.0  ;;  %v475_v58 = vpop.f32.mrb[4].mxu1 }
 0x1c8   : > { %v2504_v59 = vpack.c.bf16 %v488_v48, %v486_v43  ;;  %v477_v1 = vpop.f32.mrb[5].mxu1  ;;  %v476_v5 = vadd.f32 %v475_v58, %v3535_v53  ;;  %v3559_v48 = vld [vmem:[%s4160_s2 + $0x20] sm:$0xff] }
 0x1c9   : > { %v2502_v2 = vpack.c.bf16 %v489_v52, %v487_v49  ;;  %v478_v10 = vadd.f32 %v477_v1, %v3540_v61  ;;  %v3568_v49 = vld [vmem:[%s4160_s2 + $0x28] sm:$0xff]  ;;  %v835_v52 = vld [vmem:[%s3228_s20 + $0x18] sm:$0xff]  ;;  %v834_v1 = vld [vmem:[%s3228_s20 + $0x10] sm:$0xff] }
 0x1ca   : > { %v490_v32 = vmax.f32 %v476_v5, 0.0 }
 0x1cb   : > { %v481_v12 = vpop.f32.mrb[6].mxu1  ;;  %2503 = vmatprep.subr.bf16.mxu0 %v2502_v2  ;;  %v491_v39 = vmax.f32 %v478_v10, 0.0 }
 0x1cc   : > { %v482_v19 = vadd.f32 %v481_v12, %v3545_v4  ;;  %v483_v21 = vpop.f32.mrb[7].mxu1  ;;  %2505 = vmatpush1.bf16.msra.mxu0 %v2504_v59 }
 0x1cd   : > { %v484_v28 = vadd.f32 %v483_v21, %v3551_v9 }
 0x1ce   : > { %v492_v33 = vmax.f32 %v482_v19, 0.0  ;;  %v3637_v19 = vld [vmem:[%s4161_s3 + $0x58] sm:$0xff] }
 0x1cf   : > { %v493_v40 = vmax.f32 %v484_v28, 0.0  ;;  %4216 = vst [vmem:[#allocation10_spill] sm:$0xff] %v3637_v19 }
 0x1d0   : > { %v2508_v42 = vpack.c.bf16 %v492_v33, %v490_v32 }
 0x1d1   : > { %v2506_v43 = vpack.c.bf16 %v493_v40, %v491_v39 }
 0x1d3   : > { %2507 = vmatprep.subr.bf16.mxu0 %v2506_v43 }
 0x1d4   : > { %2509 = vmatpush1.bf16.msra.mxu0 %v2508_v42 }
 0x1d5   : > { %2511 = vmatprep.subr.bf16.mxu0 %v3186_v3 }
 0x1d7   : > { %2388 = vmatmul.mubr.msk.f32.vlgmr.msra.gmra.mrb[8].mxu0 %vm494_vm1, %v3559_v48 }
 0x1d8   : > { %571 = vmatprep.mubr.f32.mxu0 %v4163_v0  ;;  %2513 = vmatpush1.bf16.msra.mxu0 %v3197_v7 }
 0x1d9   : > { %2515 = vmatprep.subr.bf16.mxu0 %v3209_v11 }
 0x1db   : > { %2389 = vmatmul.mubr.msk.f32.gmra.mrb[10].mxu0 %vm494_vm1, %v3568_v49 }
 0x1dc   : > { %2517 = vmatpush1.bf16.msra.mxu0 %v3223_v15 }
 0x1dd   : > { %2519 = vmatprep.subr.bf16.mxu0 %v3231_v16 }
 0x1e0   : > { %2521 = vmatpush1.bf16.msra.mxu0 %v3248_v23 }
 0x1e1   : > { %2523 = vmatprep.subr.bf16.mxu0 %v3253_v24 }
 0x1e4   : > { %2525 = vmatpush1.bf16.msra.mxu0 %v3274_v30 }
 0x1e5   : > { %2527 = vmatprep.subr.bf16.mxu0 %v3279_v31 }
 0x1e8   : > { %2529 = vmatpush1.bf16.msra.mxu0 %v3300_v37 }
 0x1e9   : > { %2531 = vmatprep.subr.bf16.mxu0 %v3305_v38 }
 0x1ec   : > { %2533 = vmatpush1.bf16.msra.mxu0 %v3326_v44 }
 0x1ed   : > { %2535 = vmatprep.subr.bf16.mxu0 %v3331_v45 }
 0x1f0   : > { %2537 = vmatpush1.bf16.msra.mxu0 %v3347_v50 }
 0x1f1   : > { %2539 = vmatprep.subr.bf16.mxu0 %v3350_v51 }
 0x1f4   : > { %2541 = vmatpush1.bf16.msra.mxu0 %v3365_v56 }
 0x1f5   : > { %2543 = vmatprep.subr.bf16.mxu0 %v3368_v57 }
 0x1f8   : > { %2545 = vmatpush1.bf16.msra.mxu0 %v3383_v62 }
 0x1f9   : > { %2547 = vmatprep.subr.bf16.mxu0 %v3386_v63 }
 0x1fc   : > { %2549 = vmatpush1.bf16.msra.mxu0 %v3401_v6 }
 0x1fd   : > { %2551 = vmatprep.subr.bf16.mxu0 %v3404_v8 }
 0x200   : > { %2553 = vmatpush1.bf16.msra.mxu0 %v3419_v17 }
 0x201   : > { %2555 = vmatprep.subr.bf16.mxu0 %v3422_v18 }
 0x204   : > { %2557 = vmatpush1.bf16.msra.mxu0 %v3437_v25 }
 0x205   : > { %2559 = vmatprep.subr.bf16.mxu0 %v3440_v26 }
 0x208   : > { %2561 = vmatpush1.bf16.msra.mxu0 %v3455_v35 }
 0x209   : > { %2563 = vmatprep.subr.bf16.mxu0 %v3458_v36 }
 0x20c   : > { %2565 = vmatpush1.bf16.msra.mxu0 %v3473_v46 }
 0x20d   : > { %2567 = vmatprep.subr.bf16.mxu0 %v3476_v47 }
 0x210   : > { %2569 = vmatpush1.bf16.msra.mxu0 %v3491_v54 }
 0x211   : > { %2571 = vmatprep.subr.bf16.mxu0 %v3494_v55 }
 0x214   : > { %2573 = vmatpush1.bf16.msra.mxu0 %v3504_v60 }
 0x215   : > { %836 = vmatprep.subr.mxu0 %v835_v52 }
 0x2aa   : > { %v567_v58 = vpop.f32.mrb[8].mxu0 }
 0x2ab   : > { %v569_v59 = vpop.f32.mrb[9].mxu0 }
 0x2ac   : > { %642 = vmatprep.mubr.f32.mxu0 %v569_v59 }
 0x2ad   : > { %643 = vmatmul.mubr.f32.vlgmr.msra.gmra.mrb[12].mxu0 %v567_v58 }
 0x2ae   : > { %v573_v2 = vpop.f32.mrb[10].mxu0  ;;  %837 = vmatpush1.msra.mxu0 %v834_v1 }
 0x2af   : > { %v575_v5 = vpop.f32.mrb[11].mxu0 }
 0x2b0   : > { %648 = vmatprep.mubr.f32.mxu0 %v575_v5 }
 0x2b1   : > { %649 = vmatmul.mubr.f32.gmra.mrb[14].mxu0 %v573_v2 }
 0x2b2   : > { %900 = vmatprep.mubr.f32.mxu0 %v4163_v0 }
 0x2b5   : > { %2397 = vmatmul.mubr.msk.f32.vlgmr.msra.gmra.mrb[16].mxu0 %vm295_vm0, %v3220_v14  ;;  %v3621_v14 = vld [vmem:[%s4161_s3 + $0x40] sm:$0xff] }
 0x2b6   : > { %906 = vmatprep.mubr.f32.mxu0 %v4163_v0  ;;  %4213 = vst [vmem:[#allocation7_spill] sm:$0xff] %v3621_v14 }
 0x2b9   : > { %2398 = vmatmul.mubr.msk.f32.gmra.mrb[18].mxu0 %vm295_vm0, %v3265_v27  ;;  %v3626_v27 = vld [vmem:[%s4161_s3 + $0x48] sm:$0xff] }
 0x2ba   : > { %912 = vmatprep.mubr.f32.mxu0 %v4163_v0  ;;  %4214 = vst [vmem:[#allocation8_spill] sm:$0xff] %v3626_v27 }
 0x2bd   : > { %2399 = vmatmul.mubr.msk.f32.gmra.mrb[20].mxu0 %vm295_vm0, %v3291_v34  ;;  %v3631_v34 = vld [vmem:[%s4161_s3 + $0x50] sm:$0xff] }
 0x2be   : > { %918 = vmatprep.mubr.f32.mxu0 %v4163_v0  ;;  %4215 = vst [vmem:[#allocation9_spill] sm:$0xff] %v3631_v34 }
 0x2c1   : > { %2400 = vmatmul.mubr.msk.f32.gmra.mrb[22].mxu0 %vm295_vm0, %v3317_v41 }
 0x2c2   : > { %1086 = vmatprep.mubr.f32.mxu0 %v4163_v0 }
 0x380   : > { %v644_v10 = vpop.f32.mrb[12].mxu0 }
 0x381   : > { %v646_v12 = vpop.f32.mrb[13].mxu0  ;;  %v645_v41 = vadd.f32 %v644_v10, %v3621_v14  ;;  %v3645_v10 = vld [vmem:[%s4160_s2 + $0x30] sm:$0xff] }
 0x382   : > { %v647_v21 = vadd.f32 %v646_v12, %v3626_v27  ;;  %4217 = vst [vmem:[#allocation11_spill] sm:$0xff] %v3645_v10 }
 0x383   : > { %v655_v40 = vmax.f32 %v645_v41, 0.0 }
 0x384   : > { %v650_v28 = vpop.f32.mrb[14].mxu0  ;;  %v656_v43 = vmax.f32 %v647_v21, 0.0  ;;  %v3655_v21 = vld [vmem:[%s4160_s2 + $0x38] sm:$0xff] }
 0x385   : > { %v651_v32 = vadd.f32 %v650_v28, %v3631_v34  ;;  %v652_v33 = vpop.f32.mrb[15].mxu0  ;;  %4218 = vst [vmem:[#allocation12_spill] sm:$0xff] %v3655_v21 }
 0x386   : > { %v653_v39 = vadd.f32 %v652_v33, %v3637_v19  ;;  %v3665_v33 = vld [vmem:[%s4160_s2 + $0x40] sm:$0xff] }
 0x387   : > { %v657_v42 = vmax.f32 %v651_v32, 0.0  ;;  %4219 = vst [vmem:[#allocation13_spill] sm:$0xff] %v3665_v33 }
 0x388   : > { %v658_v52 = vmax.f32 %v653_v39, 0.0  ;;  %v902_v58 = vpop.f32.mrb[16].mxu0 }
 0x389   : > { %v2576_v59 = vpack.c.bf16 %v657_v42, %v655_v40  ;;  %v904_v1 = vpop.f32.mrb[17].mxu0  ;;  %v3701_v40 = vld [vmem:[%s4161_s3 + $0x60] sm:$0xff]  ;;  %v3706_v42 = vld [vmem:[%s4161_s3 + $0x68] sm:$0xff] }
 0x38a   : > { %v2574_v2 = vpack.c.bf16 %v658_v52, %v656_v43  ;;  %4220 = vst [vmem:[#allocation14_spill] sm:$0xff] %v3701_v40  ;;  %4221 = vst [vmem:[#allocation15_spill] sm:$0xff] %v3706_v42 }
 0x38c   : > { %2575 = vmatprep.subr.bf16.mxu1 %v2574_v2  ;;  %v908_v5 = vpop.f32.mrb[18].mxu0 }
 0x38d   : > { %2577 = vmatpush1.bf16.msra.mxu1 %v2576_v59  ;;  %v910_v12 = vpop.f32.mrb[19].mxu0 }
 0x38e   : > { %2579 = vmatprep.subr.bf16.mxu1 %v3186_v3 }
 0x390   : > { %2390 = vmatmul.mubr.msk.f32.vlgmr.msra.gmra.mrb[8].mxu1 %vm659_vm2, %v3645_v10  ;;  %v914_v41 = vpop.f32.mrb[20].mxu0 }
 0x391   : > { %2581 = vmatpush1.bf16.msra.mxu1 %v3197_v7  ;;  %739 = vmatprep.mubr.f32.mxu1 %v4163_v0  ;;  %v916_v28 = vpop.f32.mrb[21].mxu0 }
 0x392   : > { %2583 = vmatprep.subr.bf16.mxu1 %v3209_v11 }
 0x394   : > { %2391 = vmatmul.mubr.msk.f32.gmra.mrb[10].mxu1 %vm659_vm2, %v3655_v21  ;;  %v920_v32 = vpop.f32.mrb[22].mxu0 }
 0x395   : > { %2585 = vmatpush1.bf16.msra.mxu1 %v3223_v15  ;;  %745 = vmatprep.mubr.f32.mxu1 %v4163_v0  ;;  %v922_v39 = vpop.f32.mrb[23].mxu0 }
 0x396   : > { %2587 = vmatprep.subr.bf16.mxu1 %v3231_v16 }
 0x398   : > { %2392 = vmatmul.mubr.msk.f32.gmra.mrb[12].mxu1 %vm659_vm2, %v3665_v33 }
 0x399   : > { %2589 = vmatpush1.bf16.msra.mxu1 %v3248_v23  ;;  %989 = vmatprep.mubr.f32.mxu1 %v904_v1 }
 0x39a   : > { %2591 = vmatprep.subr.bf16.mxu1 %v3253_v24 }
 0x39d   : > { %2593 = vmatpush1.bf16.msra.mxu1 %v3274_v30 }
 0x39e   : > { %2595 = vmatprep.subr.bf16.mxu1 %v3279_v31 }
 0x3a1   : > { %2597 = vmatpush1.bf16.msra.mxu1 %v3300_v37 }
 0x3a2   : > { %2599 = vmatprep.subr.bf16.mxu1 %v3305_v38 }
 0x3a5   : > { %2601 = vmatpush1.bf16.msra.mxu1 %v3326_v44 }
 0x3a6   : > { %2603 = vmatprep.subr.bf16.mxu1 %v3331_v45 }
 0x3a9   : > { %2605 = vmatpush1.bf16.msra.mxu1 %v3347_v50 }
 0x3aa   : > { %2607 = vmatprep.subr.bf16.mxu1 %v3350_v51 }
 0x3ad   : > { %2609 = vmatpush1.bf16.msra.mxu1 %v3365_v56 }
 0x3ae   : > { %2611 = vmatprep.subr.bf16.mxu1 %v3368_v57 }
 0x3b1   : > { %2613 = vmatpush1.bf16.msra.mxu1 %v3383_v62 }
 0x3b2   : > { %2615 = vmatprep.subr.bf16.mxu1 %v3386_v63 }
 0x3b5   : > { %2617 = vmatpush1.bf16.msra.mxu1 %v3401_v6 }
 0x3b6   : > { %2619 = vmatprep.subr.bf16.mxu1 %v3404_v8 }
 0x3b9   : > { %2621 = vmatpush1.bf16.msra.mxu1 %v3419_v17 }
 0x3ba   : > { %2623 = vmatprep.subr.bf16.mxu1 %v3422_v18 }
 0x3bd   : > { %2625 = vmatpush1.bf16.msra.mxu1 %v3437_v25 }
 0x3be   : > { %2627 = vmatprep.subr.bf16.mxu1 %v3440_v26 }
 0x3c1   : > { %2629 = vmatpush1.bf16.msra.mxu1 %v3455_v35 }
 0x3c2   : > { %2631 = vmatprep.subr.bf16.mxu1 %v3458_v36 }
 0x3c5   : > { %2633 = vmatpush1.bf16.msra.mxu1 %v3473_v46 }
 0x3c6   : > { %2635 = vmatprep.subr.bf16.mxu1 %v3476_v47 }
 0x3c9   : > { %2637 = vmatpush1.bf16.msra.mxu1 %v3491_v54 }
 0x3ca   : > { %2639 = vmatprep.subr.bf16.mxu1 %v3494_v55 }
 0x3cd   : > { %2641 = vmatpush1.bf16.msra.mxu1 %v3504_v60 }
 0x3d0   : > { %990 = vmatmul.mubr.f32.vlgmr.msra.gmra.mrb[14].mxu1 %v902_v58 }
 0x3d1   : > { %995 = vmatprep.mubr.f32.mxu1 %v910_v12 }
 0x3d4   : > { %996 = vmatmul.mubr.f32.gmra.mrb[16].mxu1 %v908_v5 }
 0x3d5   : > { %1001 = vmatprep.mubr.f32.mxu1 %v916_v28  ;;  %v3718_v28 = vld [vmem:[%s4161_s3 + $0x88] sm:$0xff] }
 0x3d6   : > { %4223 = vst [vmem:[#allocation17_spill] sm:$0xff] %v3718_v28 }
 0x3d8   : > { %1002 = vmatmul.mubr.f32.gmra.mrb[18].mxu1 %v914_v41  ;;  %v3713_v41 = vld [vmem:[%s4161_s3 + $0x80] sm:$0xff] }
 0x3d9   : > { %1007 = vmatprep.mubr.f32.mxu1 %v922_v39  ;;  %4222 = vst [vmem:[#allocation16_spill] sm:$0xff] %v3713_v41  ;;  %v3723_v39 = vld [vmem:[%s4161_s3 + $0x70] sm:$0xff] }
 0x3da   : > { %4224 = vst [vmem:[#allocation18_spill] sm:$0xff] %v3723_v39 }
 0x3dc   : > { %1008 = vmatmul.mubr.f32.gmra.mrb[20].mxu1 %v920_v32 }
 0x3dd   : > { %1244 = vmatprep.mubr.f32.mxu1 %v4163_v0 }
 0x463   : > { %v735_v43 = vpop.f32.mrb[8].mxu1 }
 0x464   : > { %v736_v52 = vadd.f32 %v735_v43, %v3701_v40  ;;  %v737_v58 = vpop.f32.mrb[9].mxu1 }
 0x465   : > { %v738_v59 = vadd.f32 %v737_v58, %v3706_v42  ;;  %v3729_v58 = vld [vmem:[%s4161_s3 + $0x78] sm:$0xff] }
 0x466   : > { %v2393_v1 = vmul.f32 -1.442695, %v736_v52  ;;  %4225 = vst [vmem:[#allocation19_spill] sm:$0xff] %v3729_v58 }
 0x467   : > { %v2394_v2 = vmul.f32 -1.442695, %v738_v59  ;;  %v741_v5 = vpop.f32.mrb[10].mxu1 }
 0x468   : > { %3008 = vpow2.f32 %v2393_v1  ;;  %v743_v12 = vpop.f32.mrb[11].mxu1 }
 0x469   : > { %3010 = vpow2.f32 %v2394_v2  ;;  %v742_v2 = vadd.f32 %v741_v5, %v3723_v39  ;;  %v744_v42 = vadd.f32 %v743_v12, %v3729_v58 }
 0x46b   : > { %v747_v32 = vpop.f32.mrb[12].mxu1 }
 0x46c   : > { %v748_v43 = vadd.f32 %v747_v32, %v3713_v41  ;;  %v749_v52 = vpop.f32.mrb[13].mxu1 }
 0x46d   : > { %v750_v59 = vadd.f32 %v749_v52, %v3718_v28 }
 0x46e   : > { %v2395_v1 = vmul.f32 -1.442695, %v748_v43 }
 0x46f   : > { %v2396_v0 = vmul.f32 -1.442695, %v750_v59 }
 0x470   : > { %3012 = vpow2.f32 %v2395_v1  ;;  %v3742_v1 = vld [vmem:[%s4161_s3 + $0x98] sm:$0xff] }
 0x471   : > { %3014 = vpow2.f32 %v2396_v0  ;;  %4227 = vst [vmem:[#allocation21_spill] sm:$0xff] %v3742_v1 }
 0x472   : > { %v3009_v40 = vpop.eup %3008  ;;  %3016 = vtanh.f32 %v742_v2 }
 0x473   : > { %v3011_v33 = vpop.eup %3010  ;;  %v758_v21 = vadd.f32 1.0, %v3009_v40  ;;  %3018 = vtanh.f32 %v744_v42 }
 0x474   : > { %v759_v32 = vadd.f32 1.0, %v3011_v33 }
 0x475   : > { %3020 = vrcp.f32 %v758_v21  ;;  %v3737_v21 = vld [vmem:[%s4161_s3 + $0x90] sm:$0xff] }
 0x476   : > { %3022 = vrcp.f32 %v759_v32  ;;  %4226 = vst [vmem:[#allocation20_spill] sm:$0xff] %v3737_v21 }
 0x47a   : > { %v3013_v41 = vpop.eup %3012 }
 0x47b   : > { %v3015_v10 = vpop.eup %3014  ;;  %v772_v19 = vadd.f32 1.0, %v3013_v41 }
 0x47c   : > { %v3017_v52 = vpop.eup %3016  ;;  %v773_v43 = vadd.f32 1.0, %v3015_v10  ;;  %v799_v10 = vlaneseq }
 0x47d   : > { %v3019_v28 = vpop.eup %3018  ;;  %3024 = vrcp.f32 %v772_v19 }
 0x47e   : > { %3026 = vrcp.f32 %v773_v43  ;;  %v800_v32 = vshrl.u32 %v799_v10, 7  ;;  %vm3765_vm3 = vcmp.lt.s32.totalorder %v799_v10, 256 }
 0x47f   : > { %v3021_v5 = vpop.eup %3020 }
 0x480   : > { %v3023_v59 = vpop.eup %3022  ;;  %v778_v39 = vmul.f32 %v3021_v5, %v3017_v52 }
 0x481   : > { %v779_v12 = vmul.f32 %v3023_v59, %v3019_v28 }
 0x482   : > { %3028 = vtanh.f32 %v778_v39 }
 0x483   : > { %3030 = vtanh.f32 %v779_v12  ;;  %v801_v12 = vsub.s32 0, %v800_v32 }
 0x487   : > { %v3025_v0 = vpop.eup %3024 }
 0x488   : > { %v3027_v40 = vpop.eup %3026 }
 0x48c   : > { %v3029_v33 = vpop.eup %3028 }
 0x48d   : > { %v3031_v42 = vpop.eup %3030  ;;  %v782_v41 = vmul.f32 %v3029_v33, %v3025_v0  ;;  %v2383_v0 = vld [vmem:[%s4161_s3 + $0xa0] ss:$8 sm:$0x3]  ;;  %v3142_v33 = vmov 1966171168  }
 0x48e   : > { %v783_v19 = vmul.f32 %v3031_v42, %v3027_v40  ;;  %v815_v58 = vunpack.c.l.s4 %v3142_v33  ;;  %v805_v42 = vsub.s32 1, %v800_v32 }
 0x48f   : > { %v784_v28 = vmul.f32 %v782_v41, %v3737_v21 }
 0x490   : > { %v785_v39 = vmul.f32 %v783_v19, %v3742_v1  ;;  %v3750_v1 = vrot.slane %v2383_v0, %v801_v12  ;;  %v816_v21 = vunpack.c.0.s8 %v815_v58 }
 0x491   : > { %v786_v2 = vrot.slane %v784_v28, 4 }
 0x492   : > { %v792_v52 = vrot.slane %v785_v39, 4  ;;  %v3756_v14 = vsub.s32 %v816_v21, %v800_v32 }
 0x493   : > { %v787_v43 = vadd.f32 %v786_v2, %v784_v28 }
 0x494   : > { %v793_v5 = vadd.f32 %v792_v52, %v785_v39  ;;  %v3752_v39 = vrot.slane %v2383_v0, %v805_v42 }
 0x495   : > { %v788_v59 = vrot.slane %v787_v43, 2 }
 0x496   : > { %v794_v40 = vrot.slane %v793_v5, 2 }
 0x497   : > { %v789_v34 = vadd.f32 %v788_v59, %v787_v43 }
 0x498   : > { %v795_v41 = vadd.f32 %v794_v40, %v793_v5 }
 0x499   : > { %v790_v19 = vrot.slane %v789_v34, 1 }
 0x49a   : > { %v796_v28 = vrot.slane %v795_v41, 1 }
 0x49b   : > { %v791_v2 = vadd.f32 %v790_v19, %v789_v34 }
 0x49c   : > { %v797_v52 = vadd.f32 %v796_v28, %v795_v41 }
 0x49d   : > { %v809_v27 = vadd.f32 %v3750_v1, %v791_v2 }
 0x49e   : > { %v810_v33 = vadd.f32 %v3752_v39, %v797_v52 }
 0x4a0   : > { %v813_v43 = vcombine.low %v809_v27, %v810_v33 }
 0x4a2   : > { %v820_v5 = vrot.slane %v813_v43, %v3756_v14 }
 0x4a3   : > { %v991_v58 = vpop.f32.mrb[14].mxu1 }
 0x4a4   : > { %v827_v21 = vrot.slane %v820_v5, %v3756_v14  ;;  %v993_v32 = vpop.f32.mrb[15].mxu1  ;;  %v992_v27 = vadd.f32 %v991_v58, %v3511_v13 }
 0x4a5   : > { %v994_v59 = vadd.f32 %v993_v32, %v3516_v20 }
 0x4a6   : > { %833 = vst.msk [vmem:[%s3763_s28] sm:$0x3] %vm3765_vm3, %v827_v21  ;;  %v1014_v42 = vmax.f32 %v992_v27, 0.0 }
 0x4a7   : > { %v997_v12 = vpop.f32.mrb[16].mxu1  ;;  %v1015_v19 = vmax.f32 %v994_v59, 0.0 }
 0x4a8   : > { %v998_v0 = vadd.f32 %v997_v12, %v3521_v22  ;;  %v999_v40 = vpop.f32.mrb[17].mxu1 }
 0x4a9   : > { %v1000_v10 = vadd.f32 %v999_v40, %v3527_v29 }
 0x4aa   : > { %v1016_v41 = vmax.f32 %v998_v0, 0.0 }
 0x4ab   : > { %v1017_v28 = vmax.f32 %v1000_v10, 0.0  ;;  %v1003_v2 = vpop.f32.mrb[18].mxu1 }
 0x4ac   : > { %v2644_v52 = vpack.c.bf16 %v1016_v41, %v1014_v42  ;;  %v1005_v33 = vpop.f32.mrb[19].mxu1  ;;  %v1004_v5 = vadd.f32 %v1003_v2, %v3535_v53  ;;  %v4230_v41 = vmov 0.0  }
 0x4ad   : > { %v2642_v43 = vpack.c.bf16 %v1017_v28, %v1015_v19  ;;  %v1006_v58 = vadd.f32 %v1005_v33, %v3540_v61 }
 0x4ae   : > { %v1018_v27 = vmax.f32 %v1004_v5, 0.0 }
 0x4af   : > { %v1009_v21 = vpop.f32.mrb[20].mxu1  ;;  %2643 = vmatprep.subr.bf16.mxu0 %v2642_v43  ;;  %v1019_v59 = vmax.f32 %v1006_v58, 0.0  ;;  %v4231_v43 = vld [vmem:[#allocation7_spill] sm:$0xff]  ;;  %v4232_v58 = vld [vmem:[#allocation8_spill] sm:$0xff] }
 0x4b0   : > { %v1010_v32 = vadd.f32 %v1009_v21, %v3545_v4  ;;  %v1011_v12 = vpop.f32.mrb[21].mxu1  ;;  %2645 = vmatpush1.bf16.msra.mxu0 %v2644_v52 }
 0x4b1   : > { %v1012_v40 = vadd.f32 %v1011_v12, %v3551_v9  ;;  %v4233_v12 = vld [vmem:[#allocation9_spill] sm:$0xff] }
 0x4b2   : > { %v1020_v0 = vmax.f32 %v1010_v32, 0.0 }
 0x4b3   : > { %v1021_v10 = vmax.f32 %v1012_v40, 0.0 }
 0x4b4   : > { %v2648_v29 = vpack.c.bf16 %v1020_v0, %v1018_v27  ;;  %v4234_v0 = vld [vmem:[#allocation10_spill] sm:$0xff] }
 0x4b5   : > { %v2646_v42 = vpack.c.bf16 %v1021_v10, %v1019_v59 }
 0x4b7   : > { %2647 = vmatprep.subr.bf16.mxu0 %v2646_v42 }
 0x4b8   : > { %2649 = vmatpush1.bf16.msra.mxu0 %v2648_v29 }
 0x4b9   : > { %2651 = vmatprep.subr.bf16.mxu0 %v3186_v3 }
 0x4bb   : > { %2401 = vmatmul.mubr.msk.f32.vlgmr.msra.gmra.mrb[24].mxu0 %vm494_vm1, %v3559_v48 }
 0x4bc   : > { %1092 = vmatprep.mubr.f32.mxu0 %v4230_v41  ;;  %2653 = vmatpush1.bf16.msra.mxu0 %v3197_v7 }
 0x4bd   : > { %2655 = vmatprep.subr.bf16.mxu0 %v3209_v11 }
 0x4bf   : > { %2402 = vmatmul.mubr.msk.f32.gmra.mrb[26].mxu0 %vm494_vm1, %v3568_v49 }
 0x4c0   : > { %2657 = vmatpush1.bf16.msra.mxu0 %v3223_v15 }
 0x4c1   : > { %2659 = vmatprep.subr.bf16.mxu0 %v3231_v16 }
 0x4c4   : > { %2661 = vmatpush1.bf16.msra.mxu0 %v3248_v23 }
 0x4c5   : > { %2663 = vmatprep.subr.bf16.mxu0 %v3253_v24 }
 0x4c8   : > { %2665 = vmatpush1.bf16.msra.mxu0 %v3274_v30 }
 0x4c9   : > { %2667 = vmatprep.subr.bf16.mxu0 %v3279_v31 }
 0x4cc   : > { %2669 = vmatpush1.bf16.msra.mxu0 %v3300_v37 }
 0x4cd   : > { %2671 = vmatprep.subr.bf16.mxu0 %v3305_v38 }
 0x4d0   : > { %2673 = vmatpush1.bf16.msra.mxu0 %v3326_v44 }
 0x4d1   : > { %2675 = vmatprep.subr.bf16.mxu0 %v3331_v45 }
 0x4d4   : > { %2677 = vmatpush1.bf16.msra.mxu0 %v3347_v50 }
 0x4d5   : > { %2679 = vmatprep.subr.bf16.mxu0 %v3350_v51 }
 0x4d8   : > { %2681 = vmatpush1.bf16.msra.mxu0 %v3365_v56 }
 0x4d9   : > { %2683 = vmatprep.subr.bf16.mxu0 %v3368_v57 }
 0x4dc   : > { %2685 = vmatpush1.bf16.msra.mxu0 %v3383_v62 }
 0x4dd   : > { %2687 = vmatprep.subr.bf16.mxu0 %v3386_v63 }
 0x4e0   : > { %2689 = vmatpush1.bf16.msra.mxu0 %v3401_v6 }
 0x4e1   : > { %2691 = vmatprep.subr.bf16.mxu0 %v3404_v8 }
 0x4e4   : > { %2693 = vmatpush1.bf16.msra.mxu0 %v3419_v17 }
 0x4e5   : > { %2695 = vmatprep.subr.bf16.mxu0 %v3422_v18 }
 0x4e8   : > { %2697 = vmatpush1.bf16.msra.mxu0 %v3437_v25 }
 0x4e9   : > { %2699 = vmatprep.subr.bf16.mxu0 %v3440_v26 }
 0x4ec   : > { %2701 = vmatpush1.bf16.msra.mxu0 %v3455_v35 }
 0x4ed   : > { %2703 = vmatprep.subr.bf16.mxu0 %v3458_v36 }
 0x4f0   : > { %2705 = vmatpush1.bf16.msra.mxu0 %v3473_v46 }
 0x4f1   : > { %2707 = vmatprep.subr.bf16.mxu0 %v3476_v47 }
 0x4f4   : > { %2709 = vmatpush1.bf16.msra.mxu0 %v3491_v54 }
 0x4f5   : > { %2711 = vmatprep.subr.bf16.mxu0 %v3494_v55 }
 0x4f8   : > { %2713 = vmatpush1.bf16.msra.mxu0 %v3504_v60 }
 0x4f9   : > { %2719 = vmatprep.subr.bf16.mxu0 %v3186_v3 }
 0x58e   : > { %v1088_v29 = vpop.f32.mrb[24].mxu0 }
 0x58f   : > { %v1090_v19 = vpop.f32.mrb[25].mxu0 }
 0x590   : > { %1163 = vmatprep.mubr.f32.mxu0 %v1090_v19 }
 0x591   : > { %1164 = vmatmul.mubr.f32.vlgmr.msra.gmra.mrb[28].mxu0 %v1088_v29 }
 0x592   : > { %v1094_v28 = vpop.f32.mrb[26].mxu0  ;;  %2721 = vmatpush1.bf16.msra.mxu0 %v3197_v7 }
 0x593   : > { %v1096_v2 = vpop.f32.mrb[27].mxu0  ;;  %2723 = vmatprep.subr.bf16.mxu0 %v3209_v11 }
 0x594   : > { %1169 = vmatprep.mubr.f32.mxu0 %v1096_v2 }
 0x595   : > { %1170 = vmatmul.mubr.f32.gmra.mrb[30].mxu0 %v1094_v28 }
 0x596   : > { %2725 = vmatpush1.bf16.msra.mxu0 %v3223_v15 }
 0x597   : > { %2727 = vmatprep.subr.bf16.mxu0 %v3231_v16 }
 0x59a   : > { %2729 = vmatpush1.bf16.msra.mxu0 %v3248_v23 }
 0x59b   : > { %2731 = vmatprep.subr.bf16.mxu0 %v3253_v24 }
 0x59e   : > { %2733 = vmatpush1.bf16.msra.mxu0 %v3274_v30 }
 0x59f   : > { %2735 = vmatprep.subr.bf16.mxu0 %v3279_v31 }
 0x5a2   : > { %2737 = vmatpush1.bf16.msra.mxu0 %v3300_v37 }
 0x5a3   : > { %2739 = vmatprep.subr.bf16.mxu0 %v3305_v38 }
 0x5a6   : > { %2741 = vmatpush1.bf16.msra.mxu0 %v3326_v44 }
 0x5a7   : > { %2743 = vmatprep.subr.bf16.mxu0 %v3331_v45 }
 0x5aa   : > { %2745 = vmatpush1.bf16.msra.mxu0 %v3347_v50 }
 0x5ab   : > { %2747 = vmatprep.subr.bf16.mxu0 %v3350_v51 }
 0x5ae   : > { %2749 = vmatpush1.bf16.msra.mxu0 %v3365_v56 }
 0x5af   : > { %2751 = vmatprep.subr.bf16.mxu0 %v3368_v57 }
 0x5b2   : > { %2753 = vmatpush1.bf16.msra.mxu0 %v3383_v62 }
 0x5b3   : > { %2755 = vmatprep.subr.bf16.mxu0 %v3386_v63 }
 0x5b6   : > { %2757 = vmatpush1.bf16.msra.mxu0 %v3401_v6 }
 0x5b7   : > { %2759 = vmatprep.subr.bf16.mxu0 %v3404_v8 }
 0x5ba   : > { %2761 = vmatpush1.bf16.msra.mxu0 %v3419_v17 }
 0x5bb   : > { %2763 = vmatprep.subr.bf16.mxu0 %v3422_v18 }
 0x5be   : > { %2765 = vmatpush1.bf16.msra.mxu0 %v3437_v25 }
 0x5bf   : > { %2767 = vmatprep.subr.bf16.mxu0 %v3440_v26 }
 0x5c2   : > { %2769 = vmatpush1.bf16.msra.mxu0 %v3455_v35 }
 0x5c3   : > { %2771 = vmatprep.subr.bf16.mxu0 %v3458_v36 }
 0x5c6   : > { %2773 = vmatpush1.bf16.msra.mxu0 %v3473_v46 }
 0x5c7   : > { %2775 = vmatprep.subr.bf16.mxu0 %v3476_v47 }
 0x5ca   : > { %2777 = vmatpush1.bf16.msra.mxu0 %v3491_v54 }
 0x5cb   : > { %2779 = vmatprep.subr.bf16.mxu0 %v3494_v55 }
 0x5ce   : > { %2781 = vmatpush1.bf16.msra.mxu0 %v3504_v60  ;;  %v1331_v60 = vld [vmem:[%s3228_s20 + $0x28] sm:$0xff] }
 0x664   : > { %v1165_v52 = vpop.f32.mrb[28].mxu0 }
 0x665   : > { %v1167_v33 = vpop.f32.mrb[29].mxu0  ;;  %v1166_v5 = vadd.f32 %v1165_v52, %v4231_v43  ;;  %v1330_v52 = vld [vmem:[%s3228_s20 + $0x20] sm:$0xff]  ;;  %v4235_v43 = vld [vmem:[#allocation11_spill] sm:$0xff] }
 0x666   : > { %v1168_v21 = vadd.f32 %v1167_v33, %v4232_v58  ;;  %v4236_v33 = vld [vmem:[#allocation12_spill] sm:$0xff]  ;;  %v4245_v58 = vld [vmem:[#allocation17_spill] sm:$0xff] }
 0x667   : > { %v1176_v10 = vmax.f32 %v1166_v5, 0.0  ;;  %v4237_v5 = vld [vmem:[#allocation13_spill] sm:$0xff] }
 0x668   : > { %v1171_v32 = vpop.f32.mrb[30].mxu0  ;;  %v1177_v29 = vmax.f32 %v1168_v21, 0.0  ;;  %v3876_v21 = vld [vmem:[%s4160_s2 + $0x8] sm:$0xff] }
 0x669   : > { %v1172_v40 = vadd.f32 %v1171_v32, %v4233_v12  ;;  %v1173_v27 = vpop.f32.mrb[31].mxu0  ;;  %4239 = vst [vmem:[#allocation23_spill] sm:$0xff] %v3876_v21  ;;  %v3884_v32 = vld [vmem:[%s4160_s2 + $0x10] sm:$0xff] }
 0x66a   : > { %v1174_v59 = vadd.f32 %v1173_v27, %v4234_v0  ;;  %4240 = vst [vmem:[#allocation24_spill] sm:$0xff] %v3884_v32 }
 0x66b   : > { %v1178_v42 = vmax.f32 %v1172_v40, 0.0  ;;  %v3892_v40 = vld [vmem:[%s4160_s2 + $0x18] sm:$0xff] }
 0x66c   : > { %v1179_v19 = vmax.f32 %v1174_v59, 0.0  ;;  %4241 = vst [vmem:[#allocation25_spill] sm:$0xff] %v3892_v40  ;;  %v4242_v59 = vld [vmem:[#allocation14_spill] sm:$0xff] }
 0x66d   : > { %v2716_v28 = vpack.c.bf16 %v1178_v42, %v1176_v10 }
 0x66e   : > { %v2714_v2 = vpack.c.bf16 %v1179_v19, %v1177_v29  ;;  %v4243_v29 = vld [vmem:[#allocation15_spill] sm:$0xff] }
 0x670   : > { %2715 = vmatprep.subr.bf16.mxu1 %v2714_v2 }
 0x671   : > { %2717 = vmatpush1.bf16.msra.mxu1 %v2716_v28 }
 0x672   : > { %1332 = vmatprep.subr.mxu1 %v1331_v60  ;;  %v3868_v60 = vld [vmem:[%s4160_s2] sm:$0xff] }
 0x673   : > { %4238 = vst [vmem:[#allocation22_spill] sm:$0xff] %v3868_v60 }
 0x674   : > { %2403 = vmatmul.mubr.msk.f32.vlgmr.msra.gmra.mrb[22].mxu1 %vm659_vm2, %v4235_v43  ;;  %v4244_v43 = vld [vmem:[#allocation16_spill] sm:$0xff] }
 0x675   : > { %1250 = vmatprep.mubr.f32.mxu1 %v4230_v41  ;;  %1333 = vmatpush1.msra.mxu1 %v1330_v52 }
 0x678   : > { %2404 = vmatmul.mubr.msk.f32.gmra.mrb[24].mxu1 %vm659_vm2, %v4236_v33 }
 0x679   : > { %1256 = vmatprep.mubr.f32.mxu1 %v4230_v41 }
 0x67c   : > { %2405 = vmatmul.mubr.msk.f32.gmra.mrb[26].mxu1 %vm659_vm2, %v4237_v5 }
 0x67d   : > { %1396 = vmatprep.mubr.f32.mxu1 %v4230_v41 }
 0x680   : > { %2410 = vmatmul.mubr.msk.f32.vlgmr.msra.gmra.mrb[28].mxu1 %vm295_vm0, %v3868_v60 }
 0x681   : > { %1402 = vmatprep.mubr.f32.mxu1 %v4230_v41 }
 0x684   : > { %2411 = vmatmul.mubr.msk.f32.gmra.mrb[30].mxu1 %vm295_vm0, %v3876_v21  ;;  %v4246_v21 = vld [vmem:[#allocation18_spill] sm:$0xff] }
 0x685   : > { %1408 = vmatprep.mubr.f32.mxu1 %v4230_v41 }
 0x688   : > { %2412 = vmatmul.mubr.msk.f32.gmra.mrb[32].mxu1 %vm295_vm0, %v3884_v32 }
 0x689   : > { %1414 = vmatprep.mubr.f32.mxu1 %v4230_v41 }
 0x68c   : > { %2413 = vmatmul.mubr.msk.f32.gmra.mrb[34].mxu1 %vm295_vm0, %v3892_v40 }
 0x68d   : > { %1582 = vmatprep.mubr.f32.mxu1 %v4230_v41 }
 0x747   : > { %v1246_v27 = vpop.f32.mrb[22].mxu1 }
 0x748   : > { %v1247_v10 = vadd.f32 %v1246_v27, %v4242_v59  ;;  %v1248_v42 = vpop.f32.mrb[23].mxu1  ;;  %v4247_v59 = vld [vmem:[#allocation19_spill] sm:$0xff] }
 0x749   : > { %v1249_v19 = vadd.f32 %v1248_v42, %v4243_v29 }
 0x74a   : > { %v2406_v28 = vmul.f32 -1.442695, %v1247_v10 }
 0x74b   : > { %v2407_v2 = vmul.f32 -1.442695, %v1249_v19  ;;  %v1252_v52 = vpop.f32.mrb[24].mxu1 }
 0x74c   : > { %3032 = vpow2.f32 %v2406_v28  ;;  %v1254_v5 = vpop.f32.mrb[25].mxu1  ;;  %v1253_v60 = vadd.f32 %v1252_v52, %v4246_v21  ;;  %v4249_v21 = vld [vmem:[#allocation21_spill] sm:$0xff] }
 0x74d   : > { %3034 = vpow2.f32 %v2407_v2  ;;  %v1255_v54 = vadd.f32 %v1254_v5, %v4247_v59 }
 0x74f   : > { %v1258_v33 = vpop.f32.mrb[26].mxu1 }
 0x750   : > { %v1259_v0 = vadd.f32 %v1258_v33, %v4244_v43  ;;  %v1260_v12 = vpop.f32.mrb[27].mxu1 }
 0x751   : > { %v1261_v40 = vadd.f32 %v1260_v12, %v4245_v58 }
 0x752   : > { %v2408_v32 = vmul.f32 -1.442695, %v1259_v0 }
 0x753   : > { %v2409_v55 = vmul.f32 -1.442695, %v1261_v40  ;;  %v1398_v27 = vpop.f32.mrb[28].mxu1 }
 0x754   : > { %3036 = vpow2.f32 %v2408_v32  ;;  %v1400_v10 = vpop.f32.mrb[29].mxu1 }
 0x755   : > { %3038 = vpow2.f32 %v2409_v55  ;;  %1485 = vmatprep.mubr.f32.mxu0 %v1400_v10 }
 0x756   : > { %v3033_v42 = vpop.eup %3032  ;;  %1486 = vmatmul.mubr.f32.vlgmr.msra.gmra.mrb[32].mxu0 %v1398_v27  ;;  %3040 = vtanh.f32 %v1253_v60 }
 0x757   : > { %v3035_v19 = vpop.eup %3034  ;;  %v1269_v28 = vadd.f32 1.0, %v3033_v42  ;;  %v1404_v33 = vpop.f32.mrb[30].mxu1  ;;  %3042 = vtanh.f32 %v1255_v54 }
 0x758   : > { %v1270_v2 = vadd.f32 1.0, %v3035_v19  ;;  %v1406_v12 = vpop.f32.mrb[31].mxu1 }
 0x759   : > { %3044 = vrcp.f32 %v1269_v28  ;;  %1491 = vmatprep.mubr.f32.mxu0 %v1406_v12 }
 0x75a   : > { %3046 = vrcp.f32 %v1270_v2  ;;  %1492 = vmatmul.mubr.f32.gmra.mrb[34].mxu0 %v1404_v33 }
 0x75b   : > { %v1410_v0 = vpop.f32.mrb[32].mxu1 }
 0x75c   : > { %v1412_v40 = vpop.f32.mrb[33].mxu1 }
 0x75d   : > { %1497 = vmatprep.mubr.f32.mxu0 %v1412_v40 }
 0x75e   : > { %v3037_v5 = vpop.eup %3036  ;;  %1498 = vmatmul.mubr.f32.gmra.mrb[36].mxu0 %v1410_v0 }
 0x75f   : > { %v3039_v55 = vpop.eup %3038  ;;  %v1416_v32 = vpop.f32.mrb[34].mxu1  ;;  %v1283_v52 = vadd.f32 1.0, %v3037_v5 }
 0x760   : > { %v1418_v27 = vpop.f32.mrb[35].mxu1  ;;  %v3041_v10 = vpop.eup %3040  ;;  %v1284_v42 = vadd.f32 1.0, %v3039_v55  ;;  %v4248_v55 = vld [vmem:[#allocation20_spill] sm:$0xff] }
 0x761   : > { %1503 = vmatprep.mubr.f32.mxu0 %v1418_v27  ;;  %v3043_v60 = vpop.eup %3042  ;;  %3048 = vrcp.f32 %v1283_v52 }
 0x762   : > { %1504 = vmatmul.mubr.f32.gmra.mrb[38].mxu0 %v1416_v32  ;;  %3050 = vrcp.f32 %v1284_v42 }
 0x763   : > { %v3045_v54 = vpop.eup %3044  ;;  %1740 = vmatprep.mubr.f32.mxu0 %v4230_v41 }
 0x764   : > { %v3047_v19 = vpop.eup %3046  ;;  %v1289_v28 = vmul.f32 %v3045_v54, %v3041_v10 }
 0x765   : > { %v1290_v33 = vmul.f32 %v3047_v19, %v3043_v60 }
 0x766   : > { %3052 = vtanh.f32 %v1289_v28 }
 0x767   : > { %3054 = vtanh.f32 %v1290_v33 }
 0x76b   : > { %v3049_v2 = vpop.eup %3048 }
 0x76c   : > { %v3051_v12 = vpop.eup %3050 }
 0x770   : > { %v3053_v0 = vpop.eup %3052 }
 0x771   : > { %v3055_v40 = vpop.eup %3054  ;;  %v1293_v5 = vmul.f32 %v3053_v0, %v3049_v2 }
 0x772   : > { %v1294_v59 = vmul.f32 %v3055_v40, %v3051_v12 }
 0x773   : > { %v1295_v27 = vmul.f32 %v1293_v5, %v4248_v55 }
 0x774   : > { %v1296_v32 = vmul.f32 %v1294_v59, %v4249_v21 }
 0x775   : > { %v1297_v58 = vrot.slane %v1295_v27, 4 }
 0x776   : > { %v1303_v43 = vrot.slane %v1296_v32, 4 }
 0x777   : > { %v1298_v29 = vadd.f32 %v1297_v58, %v1295_v27 }
 0x778   : > { %v1304_v10 = vadd.f32 %v1303_v43, %v1296_v32 }
 0x779   : > { %v1299_v52 = vrot.slane %v1298_v29, 2 }
 0x77a   : > { %v1305_v60 = vrot.slane %v1304_v10, 2 }
 0x77b   : > { %v1300_v42 = vadd.f32 %v1299_v52, %v1298_v29  ;;  %v4250_v52 = vld [vmem:[#allocation6_spill] sm:$0xff] }
 0x77c   : > { %v1306_v54 = vadd.f32 %v1305_v60, %v1304_v10 }
 0x77d   : > { %v1301_v19 = vrot.slane %v1300_v42, 1 }
 0x77e   : > { %v1307_v28 = vrot.slane %v1306_v54, 1 }
 0x77f   : > { %v1302_v33 = vadd.f32 %v1301_v19, %v1300_v42 }
 0x780   : > { %v1308_v47 = vadd.f32 %v1307_v28, %v1306_v54 }
 0x781   : > { %v1309_v2 = vadd.f32 %v1302_v33, %v3750_v1 }
 0x782   : > { %v1310_v12 = vadd.f32 %v1308_v47, %v3752_v39 }
 0x784   : > { %v1313_v0 = vcombine.low %v1309_v2, %v1310_v12 }
 0x786   : > { %v1320_v59 = vrot.slane %v1313_v0, %v3756_v14 }
 0x788   : > { %v1327_v40 = vrot.slane %v1320_v59, %v3756_v14 }
 0x78a   : > { %1329 = vst.msk [vmem:[%s3763_s28 + $0x2] sm:$0x3] %vm3765_vm3, %v1327_v40 }
 0x829   : > { %v1487_v43 = vpop.f32.mrb[32].mxu0 }
 0x82a   : > { %v1489_v58 = vpop.f32.mrb[33].mxu0  ;;  %v1488_v29 = vadd.f32 %v1487_v43, %v3511_v13 }
 0x82b   : > { %v1490_v5 = vadd.f32 %v1489_v58, %v3516_v20 }
 0x82c   : > { %v1510_v60 = vmax.f32 %v1488_v29, 0.0 }
 0x82d   : > { %v1493_v27 = vpop.f32.mrb[34].mxu0  ;;  %v1511_v54 = vmax.f32 %v1490_v5, 0.0 }
 0x82e   : > { %v1494_v32 = vadd.f32 %v1493_v27, %v3521_v22  ;;  %v1495_v10 = vpop.f32.mrb[35].mxu0 }
 0x82f   : > { %v1496_v47 = vadd.f32 %v1495_v10, %v4250_v52  ;;  %v1826_v52 = vld [vmem:[%s3228_s20 + $0x30] sm:$0xff] }
 0x830   : > { %v1512_v42 = vmax.f32 %v1494_v32, 0.0 }
 0x831   : > { %v1513_v19 = vmax.f32 %v1496_v47, 0.0  ;;  %v1499_v28 = vpop.f32.mrb[36].mxu0 }
 0x832   : > { %v2784_v33 = vpack.c.bf16 %v1512_v42, %v1510_v60  ;;  %v1501_v2 = vpop.f32.mrb[37].mxu0  ;;  %v1500_v0 = vadd.f32 %v1499_v28, %v3535_v53  ;;  %v4251_v53 = vld [vmem:[#allocation2_spill] sm:$0xff]  ;;  %v4258_v28 = vld [vmem:[#allocation25_spill] sm:$0xff] }
 0x833   : > { %v2782_v12 = vpack.c.bf16 %v1513_v19, %v1511_v54  ;;  %v1502_v13 = vadd.f32 %v1501_v2, %v3540_v61  ;;  %v4252_v61 = vld [vmem:[#allocation3_spill] sm:$0xff]  ;;  %v4255_v42 = vld [vmem:[#allocation22_spill] sm:$0xff]  ;;  %v4257_v19 = vld [vmem:[#allocation24_spill] sm:$0xff] }
 0x834   : > { %v1514_v43 = vmax.f32 %v1500_v0, 0.0  ;;  %v4256_v54 = vld [vmem:[#allocation23_spill] sm:$0xff] }
 0x835   : > { %v1505_v59 = vpop.f32.mrb[38].mxu0  ;;  %2783 = vmatprep.subr.bf16.mxu1 %v2782_v12  ;;  %v1515_v29 = vmax.f32 %v1502_v13, 0.0  ;;  %v4259_v12 = vld [vmem:[#allocation7_spill] sm:$0xff]  ;;  %v4260_v13 = vld [vmem:[#allocation8_spill] sm:$0xff] }
 0x836   : > { %v1506_v20 = vadd.f32 %v1505_v59, %v3545_v4  ;;  %v1507_v22 = vpop.f32.mrb[39].mxu0  ;;  %2785 = vmatpush1.bf16.msra.mxu1 %v2784_v33  ;;  %v4253_v4 = vld [vmem:[#allocation4_spill] sm:$0xff] }
 0x837   : > { %v1508_v40 = vadd.f32 %v1507_v22, %v3551_v9  ;;  %v4254_v9 = vld [vmem:[#allocation5_spill] sm:$0xff] }
 0x838   : > { %v1516_v58 = vmax.f32 %v1506_v20, 0.0  ;;  %v4261_v22 = vld [vmem:[#allocation9_spill] sm:$0xff] }
 0x839   : > { %v1517_v5 = vmax.f32 %v1508_v40, 0.0 }
 0x83a   : > { %v2788_v27 = vpack.c.bf16 %v1516_v58, %v1514_v43  ;;  %v4262_v58 = vld [vmem:[#allocation10_spill] sm:$0xff] }
 0x83b   : > { %v2786_v32 = vpack.c.bf16 %v1517_v5, %v1515_v29 }
 0x83d   : > { %2787 = vmatprep.subr.bf16.mxu1 %v2786_v32 }
 0x83e   : > { %2789 = vmatpush1.bf16.msra.mxu1 %v2788_v27 }
 0x83f   : > { %2791 = vmatprep.subr.bf16.mxu1 %v3186_v3 }
 0x841   : > { %2414 = vmatmul.mubr.msk.f32.vlgmr.msra.gmra.mrb[36].mxu1 %vm494_vm1, %v3559_v48  ;;  %v1827_v48 = vld [vmem:[%s3228_s20 + $0x38] sm:$0xff] }
 0x842   : > { %1588 = vmatprep.mubr.f32.mxu1 %v4230_v41  ;;  %2793 = vmatpush1.bf16.msra.mxu1 %v3197_v7 }
 0x843   : > { %2795 = vmatprep.subr.bf16.mxu1 %v3209_v11 }
 0x845   : > { %2415 = vmatmul.mubr.msk.f32.gmra.mrb[38].mxu1 %vm494_vm1, %v3568_v49 }
 0x846   : > { %2797 = vmatpush1.bf16.msra.mxu1 %v3223_v15 }
 0x847   : > { %2799 = vmatprep.subr.bf16.mxu1 %v3231_v16 }
 0x84a   : > { %2801 = vmatpush1.bf16.msra.mxu1 %v3248_v23 }
 0x84b   : > { %2803 = vmatprep.subr.bf16.mxu1 %v3253_v24 }
 0x84e   : > { %2805 = vmatpush1.bf16.msra.mxu1 %v3274_v30 }
 0x84f   : > { %2807 = vmatprep.subr.bf16.mxu1 %v3279_v31 }
 0x852   : > { %2809 = vmatpush1.bf16.msra.mxu1 %v3300_v37 }
 0x853   : > { %2811 = vmatprep.subr.bf16.mxu1 %v3305_v38 }
 0x856   : > { %2813 = vmatpush1.bf16.msra.mxu1 %v3326_v44 }
 0x857   : > { %2815 = vmatprep.subr.bf16.mxu1 %v3331_v45 }
 0x85a   : > { %2817 = vmatpush1.bf16.msra.mxu1 %v3347_v50 }
 0x85b   : > { %2819 = vmatprep.subr.bf16.mxu1 %v3350_v51 }
 0x85e   : > { %2821 = vmatpush1.bf16.msra.mxu1 %v3365_v56 }
 0x85f   : > { %2823 = vmatprep.subr.bf16.mxu1 %v3368_v57 }
 0x862   : > { %2825 = vmatpush1.bf16.msra.mxu1 %v3383_v62 }
 0x863   : > { %2827 = vmatprep.subr.bf16.mxu1 %v3386_v63 }
 0x866   : > { %2829 = vmatpush1.bf16.msra.mxu1 %v3401_v6 }
 0x867   : > { %2831 = vmatprep.subr.bf16.mxu1 %v3404_v8 }
 0x86a   : > { %2833 = vmatpush1.bf16.msra.mxu1 %v3419_v17 }
 0x86b   : > { %2835 = vmatprep.subr.bf16.mxu1 %v3422_v18 }
 0x86e   : > { %2837 = vmatpush1.bf16.msra.mxu1 %v3437_v25 }
 0x86f   : > { %2839 = vmatprep.subr.bf16.mxu1 %v3440_v26 }
 0x872   : > { %2841 = vmatpush1.bf16.msra.mxu1 %v3455_v35 }
 0x873   : > { %2843 = vmatprep.subr.bf16.mxu1 %v3458_v36 }
 0x876   : > { %2845 = vmatpush1.bf16.msra.mxu1 %v3473_v46 }
 0x877   : > { %2847 = vmatprep.subr.bf16.mxu1 %v4251_v53 }
 0x87a   : > { %2849 = vmatpush1.bf16.msra.mxu1 %v4252_v61 }
 0x87b   : > { %2851 = vmatprep.subr.bf16.mxu1 %v4253_v4 }
 0x87e   : > { %2853 = vmatpush1.bf16.msra.mxu1 %v4254_v9 }
 0x87f   : > { %1828 = vmatprep.subr.mxu1 %v1827_v48 }
 0x914   : > { %v1584_v49 = vpop.f32.mrb[36].mxu1 }
 0x915   : > { %v1586_v10 = vpop.f32.mrb[37].mxu1 }
 0x916   : > { %1659 = vmatprep.mubr.f32.mxu1 %v1586_v10 }
 0x917   : > { %1660 = vmatmul.mubr.f32.vlgmr.msra.gmra.mrb[40].mxu1 %v1584_v49 }
 0x918   : > { %v1590_v47 = vpop.f32.mrb[38].mxu1  ;;  %1829 = vmatpush1.msra.mxu1 %v1826_v52 }
 0x919   : > { %v1592_v60 = vpop.f32.mrb[39].mxu1 }
 0x91a   : > { %1665 = vmatprep.mubr.f32.mxu1 %v1592_v60 }
 0x91b   : > { %1666 = vmatmul.mubr.f32.gmra.mrb[42].mxu1 %v1590_v47 }
 0x91c   : > { %1892 = vmatprep.mubr.f32.mxu1 %v4230_v41 }
 0x91f   : > { %2423 = vmatmul.mubr.msk.f32.vlgmr.msra.gmra.mrb[44].mxu1 %vm295_vm0, %v4255_v42 }
 0x920   : > { %1898 = vmatprep.mubr.f32.mxu1 %v4230_v41 }
 0x923   : > { %2424 = vmatmul.mubr.msk.f32.gmra.mrb[46].mxu1 %vm295_vm0, %v4256_v54  ;;  %v4263_v54 = vld [vmem:[#allocation11_spill] sm:$0xff] }
 0x924   : > { %1904 = vmatprep.mubr.f32.mxu1 %v4230_v41 }
 0x927   : > { %2425 = vmatmul.mubr.msk.f32.gmra.mrb[48].mxu1 %vm295_vm0, %v4257_v19 }
 0x928   : > { %1910 = vmatprep.mubr.f32.mxu1 %v4230_v41 }
 0x92b   : > { %2426 = vmatmul.mubr.msk.f32.gmra.mrb[50].mxu1 %vm295_vm0, %v4258_v28 }
 0x92c   : > { %2078 = vmatprep.mubr.f32.mxu1 %v4230_v41 }
 0x9ea   : > { %v1661_v33 = vpop.f32.mrb[40].mxu1 }
 0x9eb   : > { %v1663_v2 = vpop.f32.mrb[41].mxu1  ;;  %v1662_v0 = vadd.f32 %v1661_v33, %v4259_v12  ;;  %v4264_v33 = vld [vmem:[#allocation12_spill] sm:$0xff] }
 0x9ec   : > { %v1664_v59 = vadd.f32 %v1663_v2, %v4260_v13 }
 0x9ed   : > { %v1672_v5 = vmax.f32 %v1662_v0, 0.0  ;;  %v4265_v0 = vld [vmem:[#allocation13_spill] sm:$0xff] }
 0x9ee   : > { %v1667_v20 = vpop.f32.mrb[42].mxu1  ;;  %v1673_v32 = vmax.f32 %v1664_v59, 0.0  ;;  %v4266_v59 = vld [vmem:[#allocation14_spill] sm:$0xff] }
 0x9ef   : > { %v1668_v40 = vadd.f32 %v1667_v20, %v4261_v22  ;;  %v1669_v43 = vpop.f32.mrb[43].mxu1 }
 0x9f0   : > { %v1670_v29 = vadd.f32 %v1669_v43, %v4262_v58 }
 0x9f1   : > { %v1674_v27 = vmax.f32 %v1668_v40, 0.0  ;;  %v4267_v40 = vld [vmem:[#allocation15_spill] sm:$0xff] }
 0x9f2   : > { %v1675_v48 = vmax.f32 %v1670_v29, 0.0  ;;  %v1894_v49 = vpop.f32.mrb[44].mxu1 }
 0x9f3   : > { %v2856_v10 = vpack.c.bf16 %v1674_v27, %v1672_v5  ;;  %v1896_v52 = vpop.f32.mrb[45].mxu1 }
 0x9f4   : > { %v2854_v47 = vpack.c.bf16 %v1675_v48, %v1673_v32  ;;  %v4268_v48 = vld [vmem:[#allocation16_spill] sm:$0xff] }
 0x9f6   : > { %2855 = vmatprep.subr.bf16.mxu0 %v2854_v47  ;;  %v1900_v60 = vpop.f32.mrb[46].mxu1 }
 0x9f7   : > { %2857 = vmatpush1.bf16.msra.mxu0 %v2856_v10  ;;  %v1902_v42 = vpop.f32.mrb[47].mxu1 }
 0x9f8   : > { %2859 = vmatprep.subr.bf16.mxu0 %v3186_v3 }
 0x9fa   : > { %2416 = vmatmul.mubr.msk.f32.vlgmr.msra.gmra.mrb[40].mxu0 %vm659_vm2, %v4263_v54  ;;  %v1906_v19 = vpop.f32.mrb[48].mxu1 }
 0x9fb   : > { %2861 = vmatpush1.bf16.msra.mxu0 %v3197_v7  ;;  %1746 = vmatprep.mubr.f32.mxu0 %v4230_v41  ;;  %v1908_v28 = vpop.f32.mrb[49].mxu1 }
 0x9fc   : > { %2863 = vmatprep.subr.bf16.mxu0 %v3209_v11 }
 0x9fe   : > { %2417 = vmatmul.mubr.msk.f32.gmra.mrb[42].mxu0 %vm659_vm2, %v4264_v33  ;;  %v1912_v2 = vpop.f32.mrb[50].mxu1 }
 0x9ff   : > { %2865 = vmatpush1.bf16.msra.mxu0 %v3223_v15  ;;  %1752 = vmatprep.mubr.f32.mxu0 %v4230_v41  ;;  %v1914_v12 = vpop.f32.mrb[51].mxu1 }
 0xa00   : > { %2867 = vmatprep.subr.bf16.mxu0 %v3231_v16 }
 0xa02   : > { %2418 = vmatmul.mubr.msk.f32.gmra.mrb[44].mxu0 %vm659_vm2, %v4265_v0 }
 0xa03   : > { %2869 = vmatpush1.bf16.msra.mxu0 %v3248_v23  ;;  %1981 = vmatprep.mubr.f32.mxu0 %v1896_v52  ;;  %v4269_v52 = vld [vmem:[#allocation17_spill] sm:$0xff] }
 0xa04   : > { %2871 = vmatprep.subr.bf16.mxu0 %v3253_v24 }
 0xa07   : > { %2873 = vmatpush1.bf16.msra.mxu0 %v3274_v30 }
 0xa08   : > { %2875 = vmatprep.subr.bf16.mxu0 %v3279_v31 }
 0xa0b   : > { %2877 = vmatpush1.bf16.msra.mxu0 %v3300_v37 }
 0xa0c   : > { %2879 = vmatprep.subr.bf16.mxu0 %v3305_v38 }
 0xa0f   : > { %2881 = vmatpush1.bf16.msra.mxu0 %v3326_v44 }
 0xa10   : > { %2883 = vmatprep.subr.bf16.mxu0 %v3331_v45 }
 0xa13   : > { %2885 = vmatpush1.bf16.msra.mxu0 %v3347_v50 }
 0xa14   : > { %2887 = vmatprep.subr.bf16.mxu0 %v3350_v51 }
 0xa17   : > { %2889 = vmatpush1.bf16.msra.mxu0 %v3365_v56 }
 0xa18   : > { %2891 = vmatprep.subr.bf16.mxu0 %v3368_v57 }
 0xa1b   : > { %2893 = vmatpush1.bf16.msra.mxu0 %v3383_v62 }
 0xa1c   : > { %2895 = vmatprep.subr.bf16.mxu0 %v3386_v63 }
 0xa1f   : > { %2897 = vmatpush1.bf16.msra.mxu0 %v3401_v6 }
 0xa20   : > { %2899 = vmatprep.subr.bf16.mxu0 %v3404_v8 }
 0xa23   : > { %2901 = vmatpush1.bf16.msra.mxu0 %v3419_v17 }
 0xa24   : > { %2903 = vmatprep.subr.bf16.mxu0 %v3422_v18 }
 0xa27   : > { %2905 = vmatpush1.bf16.msra.mxu0 %v3437_v25 }
 0xa28   : > { %2907 = vmatprep.subr.bf16.mxu0 %v3440_v26 }
 0xa2b   : > { %2909 = vmatpush1.bf16.msra.mxu0 %v3455_v35 }
 0xa2c   : > { %2911 = vmatprep.subr.bf16.mxu0 %v3458_v36 }
 0xa2f   : > { %2913 = vmatpush1.bf16.msra.mxu0 %v3473_v46 }
 0xa30   : > { %2915 = vmatprep.subr.bf16.mxu0 %v4251_v53 }
 0xa33   : > { %2917 = vmatpush1.bf16.msra.mxu0 %v4252_v61 }
 0xa34   : > { %2919 = vmatprep.subr.bf16.mxu0 %v4253_v4 }
 0xa37   : > { %2921 = vmatpush1.bf16.msra.mxu0 %v4254_v9 }
 0xa3a   : > { %1982 = vmatmul.mubr.f32.vlgmr.msra.gmra.mrb[46].mxu0 %v1894_v49 }
 0xa3b   : > { %1987 = vmatprep.mubr.f32.mxu0 %v1902_v42  ;;  %v4270_v42 = vld [vmem:[#allocation18_spill] sm:$0xff] }
 0xa3e   : > { %1988 = vmatmul.mubr.f32.gmra.mrb[48].mxu0 %v1900_v60 }
 0xa3f   : > { %1993 = vmatprep.mubr.f32.mxu0 %v1908_v28  ;;  %v4271_v28 = vld [vmem:[#allocation19_spill] sm:$0xff] }
 0xa42   : > { %1994 = vmatmul.mubr.f32.gmra.mrb[50].mxu0 %v1906_v19 }
 0xa43   : > { %1999 = vmatprep.mubr.f32.mxu0 %v1914_v12 }
 0xa46   : > { %2000 = vmatmul.mubr.f32.gmra.mrb[52].mxu0 %v1912_v2 }
 0xa47   : > { %2236 = vmatprep.mubr.f32.mxu0 %v4230_v41 }
 0xacd   : > { %v1742_v13 = vpop.f32.mrb[40].mxu0 }
 0xace   : > { %v1743_v20 = vadd.f32 %v1742_v13, %v4266_v59  ;;  %v1744_v22 = vpop.f32.mrb[41].mxu0 }
 0xacf   : > { %v1745_v43 = vadd.f32 %v1744_v22, %v4267_v40 }
 0xad0   : > { %v2419_v58 = vmul.f32 -1.442695, %v1743_v20 }
 0xad1   : > { %v2420_v29 = vmul.f32 -1.442695, %v1745_v43  ;;  %v1748_v5 = vpop.f32.mrb[42].mxu0 }
 0xad2   : > { %3056 = vpow2.f32 %v2419_v58  ;;  %v1750_v27 = vpop.f32.mrb[43].mxu0  ;;  %v1749_v54 = vadd.f32 %v1748_v5, %v4270_v42 }
 0xad3   : > { %3058 = vpow2.f32 %v2420_v29  ;;  %v1751_v33 = vadd.f32 %v1750_v27, %v4271_v28 }
 0xad5   : > { %v1754_v32 = vpop.f32.mrb[44].mxu0 }
 0xad6   : > { %v1755_v49 = vadd.f32 %v1754_v32, %v4268_v48  ;;  %v1756_v10 = vpop.f32.mrb[45].mxu0 }
 0xad7   : > { %v1757_v47 = vadd.f32 %v1756_v10, %v4269_v52 }
 0xad8   : > { %v2421_v60 = vmul.f32 -1.442695, %v1755_v49 }
 0xad9   : > { %v2422_v19 = vmul.f32 -1.442695, %v1757_v47 }
 0xada   : > { %3060 = vpow2.f32 %v2421_v60 }
 0xadb   : > { %3062 = vpow2.f32 %v2422_v19 }
 0xadc   : > { %v3057_v2 = vpop.eup %3056  ;;  %3064 = vtanh.f32 %v1749_v54 }
 0xadd   : > { %v3059_v12 = vpop.eup %3058  ;;  %v1765_v0 = vadd.f32 1.0, %v3057_v2  ;;  %3066 = vtanh.f32 %v1751_v33 }
 0xade   : > { %v1766_v13 = vadd.f32 1.0, %v3059_v12 }
 0xadf   : > { %3068 = vrcp.f32 %v1765_v0 }
 0xae0   : > { %3070 = vrcp.f32 %v1766_v13 }
 0xae4   : > { %v3061_v59 = vpop.eup %3060 }
 0xae5   : > { %v3063_v20 = vpop.eup %3062  ;;  %v1779_v22 = vadd.f32 1.0, %v3061_v59 }
 0xae6   : > { %v3065_v40 = vpop.eup %3064  ;;  %v1780_v43 = vadd.f32 1.0, %v3063_v20 }
 0xae7   : > { %v3067_v58 = vpop.eup %3066  ;;  %3072 = vrcp.f32 %v1779_v22 }
 0xae8   : > { %3074 = vrcp.f32 %v1780_v43 }
 0xae9   : > { %v3069_v29 = vpop.eup %3068 }
 0xaea   : > { %v3071_v5 = vpop.eup %3070  ;;  %v1785_v32 = vmul.f32 %v3069_v29, %v3065_v40 }
 0xaeb   : > { %v1786_v27 = vmul.f32 %v3071_v5, %v3067_v58 }
 0xaec   : > { %3076 = vtanh.f32 %v1785_v32 }
 0xaed   : > { %3078 = vtanh.f32 %v1786_v27 }
 0xaf1   : > { %v3073_v48 = vpop.eup %3072 }
 0xaf2   : > { %v3075_v49 = vpop.eup %3074 }
 0xaf6   : > { %v3077_v10 = vpop.eup %3076 }
 0xaf7   : > { %v3079_v52 = vpop.eup %3078  ;;  %v1789_v47 = vmul.f32 %v3077_v10, %v3073_v48  ;;  %v3108_v48 = vld [vmem:[%s4161_s3] sm:$0xff]  ;;  %v3109_v10 = vld [vmem:[%s4161_s3 + $0x8] sm:$0xff] }
 0xaf8   : > { %v1790_v60 = vmul.f32 %v3079_v52, %v3075_v49 }
 0xaf9   : > { %v1791_v42 = vmul.f32 %v1789_v47, %v4248_v55 }
 0xafa   : > { %v1792_v54 = vmul.f32 %v1790_v60, %v4249_v21  ;;  %v3110_v60 = vld [vmem:[%s4161_s3 + $0x10] sm:$0xff] }
 0xafb   : > { %v1793_v19 = vrot.slane %v1791_v42, 4 }
 0xafc   : > { %v1799_v28 = vrot.slane %v1792_v54, 4 }
 0xafd   : > { %v1794_v33 = vadd.f32 %v1793_v19, %v1791_v42  ;;  %v3111_v19 = vld [vmem:[%s4161_s3 + $0x18] sm:$0xff] }
 0xafe   : > { %v1800_v2 = vadd.f32 %v1799_v28, %v1792_v54 }
 0xaff   : > { %v1795_v12 = vrot.slane %v1794_v33, 2 }
 0xb00   : > { %v1801_v0 = vrot.slane %v1800_v2, 2 }
 0xb01   : > { %v1796_v13 = vadd.f32 %v1795_v12, %v1794_v33 }
 0xb02   : > { %v1802_v59 = vadd.f32 %v1801_v0, %v1800_v2 }
 0xb03   : > { %v1797_v20 = vrot.slane %v1796_v13, 1 }
 0xb04   : > { %v1803_v22 = vrot.slane %v1802_v59, 1 }
 0xb05   : > { %v1798_v40 = vadd.f32 %v1797_v20, %v1796_v13 }
 0xb06   : > { %v1804_v43 = vadd.f32 %v1803_v22, %v1802_v59 }
 0xb07   : > { %v1805_v58 = vadd.f32 %v1798_v40, %v3750_v1  ;;  %v3112_v40 = vld [vmem:[%s4161_s3 + $0x20] sm:$0xff] }
 0xb08   : > { %v1806_v29 = vadd.f32 %v1804_v43, %v3752_v39 }
 0xb0a   : > { %v1809_v55 = vcombine.low %v1805_v58, %v1806_v29  ;;  %v3113_v58 = vld [vmem:[%s4161_s3 + $0x28] sm:$0xff] }
 0xb0c   : > { %v1816_v21 = vrot.slane %v1809_v55, %v3756_v14 }
 0xb0d   : > { %v1983_v5 = vpop.f32.mrb[46].mxu0 }
 0xb0e   : > { %v1823_v32 = vrot.slane %v1816_v21, %v3756_v14  ;;  %v1985_v27 = vpop.f32.mrb[47].mxu0  ;;  %v1984_v49 = vadd.f32 %v3108_v48, %v1983_v5  ;;  %v3114_v21 = vld [vmem:[%s4161_s3 + $0x30] sm:$0xff] }
 0xb0f   : > { %v1986_v52 = vadd.f32 %v3109_v10, %v1985_v27  ;;  %v3115_v27 = vld [vmem:[%s4161_s3 + $0x38] sm:$0xff] }
 0xb10   : > { %1825 = vst.msk [vmem:[%s3763_s28 + $0x4] sm:$0x3] %vm3765_vm3, %v1823_v32  ;;  %v2006_v33 = vmax.f32 %v1984_v49, 0.0 }
 0xb11   : > { %v1989_v47 = vpop.f32.mrb[48].mxu0  ;;  %v2007_v12 = vmax.f32 %v1986_v52, 0.0 }
 0xb12   : > { %v1990_v42 = vadd.f32 %v3110_v60, %v1989_v47  ;;  %v1991_v54 = vpop.f32.mrb[49].mxu0 }
 0xb13   : > { %v1992_v28 = vadd.f32 %v3111_v19, %v1991_v54  ;;  %v3116_v54 = vld [vmem:[%s4160_s2 + $0x20] sm:$0xff]  ;;  %v3117_v19 = vld [vmem:[%s4160_s2 + $0x28] sm:$0xff] }
 0xb14   : > { %v2008_v2 = vmax.f32 %v1990_v42, 0.0 }
 0xb15   : > { %v2009_v0 = vmax.f32 %v1992_v28, 0.0  ;;  %v1995_v13 = vpop.f32.mrb[50].mxu0 }
 0xb16   : > { %v2924_v59 = vpack.c.bf16 %v2008_v2, %v2006_v33  ;;  %v1997_v20 = vpop.f32.mrb[51].mxu0  ;;  %v1996_v43 = vadd.f32 %v3112_v40, %v1995_v13  ;;  %v3129_v40 = vld [vmem:[%s4161_s3 + $0x70] sm:$0xff] }
 0xb17   : > { %v2922_v22 = vpack.c.bf16 %v2009_v0, %v2007_v12  ;;  %v1998_v29 = vadd.f32 %v3113_v58, %v1997_v20  ;;  %v3127_v12 = vld [vmem:[%s4161_s3 + $0x80] sm:$0xff] }
 0xb18   : > { %v2010_v49 = vmax.f32 %v1996_v43, 0.0 }
 0xb19   : > { %v2001_v55 = vpop.f32.mrb[52].mxu0  ;;  %2923 = vmatprep.subr.bf16.mxu1 %v2922_v22  ;;  %v2011_v52 = vmax.f32 %v1998_v29, 0.0  ;;  %v3130_v29 = vld [vmem:[%s4161_s3 + $0x78] sm:$0xff] }
 0xb1a   : > { %v2002_v5 = vadd.f32 %v3114_v21, %v2001_v55  ;;  %v2003_v32 = vpop.f32.mrb[53].mxu0  ;;  %2925 = vmatpush1.bf16.msra.mxu1 %v2924_v59  ;;  %v3128_v59 = vld [vmem:[%s4161_s3 + $0x88] sm:$0xff] }
 0xb1b   : > { %v2004_v48 = vadd.f32 %v3115_v27, %v2003_v32 }
 0xb1c   : > { %v2012_v10 = vmax.f32 %v2002_v5, 0.0 }
 0xb1d   : > { %v2013_v47 = vmax.f32 %v2004_v48, 0.0 }
 0xb1e   : > { %v2928_v60 = vpack.c.bf16 %v2012_v10, %v2010_v49 }
 0xb1f   : > { %v2926_v42 = vpack.c.bf16 %v2013_v47, %v2011_v52 }
 0xb21   : > { %2927 = vmatprep.subr.bf16.mxu1 %v2926_v42 }
 0xb22   : > { %2929 = vmatpush1.bf16.msra.mxu1 %v2928_v60 }
 0xb23   : > { %2931 = vmatprep.subr.bf16.mxu1 %v3186_v3 }
 0xb25   : > { %2427 = vmatmul.mubr.msk.f32.vlgmr.msra.gmra.mrb[52].mxu1 %vm494_vm1, %v3116_v54 }
 0xb26   : > { %2084 = vmatprep.mubr.f32.mxu1 %v4230_v41  ;;  %2933 = vmatpush1.bf16.msra.mxu1 %v3197_v7 }
 0xb27   : > { %2935 = vmatprep.subr.bf16.mxu1 %v3209_v11 }
 0xb29   : > { %2428 = vmatmul.mubr.msk.f32.gmra.mrb[54].mxu1 %vm494_vm1, %v3117_v19 }
 0xb2a   : > { %2937 = vmatpush1.bf16.msra.mxu1 %v3223_v15 }
 0xb2b   : > { %2939 = vmatprep.subr.bf16.mxu1 %v3231_v16 }
 0xb2e   : > { %2941 = vmatpush1.bf16.msra.mxu1 %v3248_v23 }
 0xb2f   : > { %2943 = vmatprep.subr.bf16.mxu1 %v3253_v24  ;;  %v3118_v24 = vld [vmem:[%s4161_s3 + $0x40] sm:$0xff] }
 0xb32   : > { %2945 = vmatpush1.bf16.msra.mxu1 %v3274_v30 }
 0xb33   : > { %2947 = vmatprep.subr.bf16.mxu1 %v3279_v31  ;;  %v3119_v31 = vld [vmem:[%s4161_s3 + $0x48] sm:$0xff] }
 0xb36   : > { %2949 = vmatpush1.bf16.msra.mxu1 %v3300_v37 }
 0xb37   : > { %2951 = vmatprep.subr.bf16.mxu1 %v3305_v38 }
 0xb3a   : > { %2953 = vmatpush1.bf16.msra.mxu1 %v3326_v44  ;;  %v3120_v44 = vld [vmem:[%s4161_s3 + $0x50] sm:$0xff] }
 0xb3b   : > { %2955 = vmatprep.subr.bf16.mxu1 %v3331_v45 }
 0xb3e   : > { %2957 = vmatpush1.bf16.msra.mxu1 %v3347_v50 }
 0xb3f   : > { %2959 = vmatprep.subr.bf16.mxu1 %v3350_v51  ;;  %v3121_v51 = vld [vmem:[%s4161_s3 + $0x58] sm:$0xff] }
 0xb42   : > { %2961 = vmatpush1.bf16.msra.mxu1 %v3365_v56 }
 0xb43   : > { %2963 = vmatprep.subr.bf16.mxu1 %v3368_v57 }
 0xb46   : > { %2965 = vmatpush1.bf16.msra.mxu1 %v3383_v62 }
 0xb47   : > { %2967 = vmatprep.subr.bf16.mxu1 %v3386_v63 }
 0xb4a   : > { %2969 = vmatpush1.bf16.msra.mxu1 %v3401_v6 }
 0xb4b   : > { %2971 = vmatprep.subr.bf16.mxu1 %v3404_v8 }
 0xb4e   : > { %2973 = vmatpush1.bf16.msra.mxu1 %v3419_v17 }
 0xb4f   : > { %2975 = vmatprep.subr.bf16.mxu1 %v3422_v18  ;;  %v3122_v18 = vld [vmem:[%s4160_s2 + $0x30] sm:$0xff] }
 0xb52   : > { %2977 = vmatpush1.bf16.msra.mxu1 %v3437_v25  ;;  %v3123_v25 = vld [vmem:[%s4160_s2 + $0x38] sm:$0xff] }
 0xb53   : > { %2979 = vmatprep.subr.bf16.mxu1 %v3440_v26  ;;  %v3124_v26 = vld [vmem:[%s4160_s2 + $0x40] sm:$0xff] }
 0xb56   : > { %2981 = vmatpush1.bf16.msra.mxu1 %v3455_v35 }
 0xb57   : > { %2983 = vmatprep.subr.bf16.mxu1 %v3458_v36  ;;  %v3125_v36 = vld [vmem:[%s4161_s3 + $0x60] sm:$0xff] }
 0xb5a   : > { %2985 = vmatpush1.bf16.msra.mxu1 %v3473_v46 }
 0xb5b   : > { %2987 = vmatprep.subr.bf16.mxu1 %v4251_v53 }
 0xb5e   : > { %2989 = vmatpush1.bf16.msra.mxu1 %v4252_v61  ;;  %v3126_v61 = vld [vmem:[%s4161_s3 + $0x68] sm:$0xff] }
 0xb5f   : > { %2991 = vmatprep.subr.bf16.mxu1 %v4253_v4 }
 0xb62   : > { %2993 = vmatpush1.bf16.msra.mxu1 %v4254_v9 }
 0xbf8   : > { %v2080_v3 = vpop.f32.mrb[52].mxu1 }
 0xbf9   : > { %v2082_v7 = vpop.f32.mrb[53].mxu1 }
 0xbfa   : > { %2155 = vmatprep.mubr.f32.mxu1 %v2082_v7 }
 0xbfb   : > { %2156 = vmatmul.mubr.f32.vlgmr.msra.gmra.mrb[56].mxu1 %v2080_v3 }
 0xbfc   : > { %v2086_v11 = vpop.f32.mrb[54].mxu1 }
 0xbfd   : > { %v2088_v15 = vpop.f32.mrb[55].mxu1 }
 0xbfe   : > { %2161 = vmatprep.mubr.f32.mxu1 %v2088_v15 }
 0xbff   : > { %2162 = vmatmul.mubr.f32.gmra.mrb[58].mxu1 %v2086_v11 }
 0xcce   : > { %v2157_v16 = vpop.f32.mrb[56].mxu1 }
 0xccf   : > { %v2159_v23 = vpop.f32.mrb[57].mxu1  ;;  %v2158_v30 = vadd.f32 %v3118_v24, %v2157_v16 }
 0xcd0   : > { %v2160_v37 = vadd.f32 %v3119_v31, %v2159_v23 }
 0xcd1   : > { %v2168_v57 = vmax.f32 %v2158_v30, 0.0  ;;  %v3131_v30 = vld [vmem:[%s4161_s3 + $0x90] sm:$0xff] }
 0xcd2   : > { %v2163_v38 = vpop.f32.mrb[58].mxu1  ;;  %v2169_v63 = vmax.f32 %v2160_v37, 0.0  ;;  %v3132_v37 = vld [vmem:[%s4161_s3 + $0x98] sm:$0xff] }
 0xcd3   : > { %v2164_v45 = vadd.f32 %v3120_v44, %v2163_v38  ;;  %v2165_v50 = vpop.f32.mrb[59].mxu1 }
 0xcd4   : > { %v2166_v56 = vadd.f32 %v3121_v51, %v2165_v50 }
 0xcd5   : > { %v2170_v62 = vmax.f32 %v2164_v45, 0.0 }
 0xcd6   : > { %v2171_v6 = vmax.f32 %v2166_v56, 0.0 }
 0xcd7   : > { %v2996_v8 = vpack.c.bf16 %v2170_v62, %v2168_v57 }
 0xcd8   : > { %v2994_v17 = vpack.c.bf16 %v2171_v6, %v2169_v63 }
 0xcda   : > { %2995 = vmatprep.subr.bf16.mxu0 %v2994_v17 }
 0xcdb   : > { %2997 = vmatpush1.bf16.msra.mxu0 %v2996_v8 }
 0xcde   : > { %2429 = vmatmul.mubr.msk.f32.vlgmr.msra.gmra.mrb[54].mxu0 %vm659_vm2, %v3122_v18 }
 0xcdf   : > { %2242 = vmatprep.mubr.f32.mxu0 %v4230_v41 }
 0xce2   : > { %2430 = vmatmul.mubr.msk.f32.gmra.mrb[56].mxu0 %vm659_vm2, %v3123_v25 }
 0xce3   : > { %2248 = vmatprep.mubr.f32.mxu0 %v4230_v41 }
 0xce6   : > { %2431 = vmatmul.mubr.msk.f32.gmra.mrb[58].mxu0 %vm659_vm2, %v3124_v26 }
 0xdb1   : > { %v2238_v35 = vpop.f32.mrb[54].mxu0 }
 0xdb2   : > { %v2239_v46 = vadd.f32 %v3125_v36, %v2238_v35  ;;  %v2240_v53 = vpop.f32.mrb[55].mxu0 }
 0xdb3   : > { %v2241_v4 = vadd.f32 %v3126_v61, %v2240_v53 }
 0xdb4   : > { %v2432_v9 = vmul.f32 -1.442695, %v2239_v46 }
 0xdb5   : > { %v2433_v41 = vmul.f32 -1.442695, %v2241_v4  ;;  %v2244_v28 = vpop.f32.mrb[56].mxu0 }
 0xdb6   : > { %3080 = vpow2.f32 %v2432_v9  ;;  %v2246_v33 = vpop.f32.mrb[57].mxu0  ;;  %v2245_v43 = vadd.f32 %v3129_v40, %v2244_v28 }
 0xdb7   : > { %3082 = vpow2.f32 %v2433_v41  ;;  %v2247_v55 = vadd.f32 %v3130_v29, %v2246_v33 }
 0xdb9   : > { %v2250_v2 = vpop.f32.mrb[58].mxu0 }
 0xdba   : > { %v2251_v0 = vadd.f32 %v3127_v12, %v2250_v2  ;;  %v2252_v13 = vpop.f32.mrb[59].mxu0 }
 0xdbb   : > { %v2253_v20 = vadd.f32 %v3128_v59, %v2252_v13 }
 0xdbc   : > { %v2434_v22 = vmul.f32 -1.442695, %v2251_v0 }
 0xdbd   : > { %v2435_v58 = vmul.f32 -1.442695, %v2253_v20 }
 0xdbe   : > { %3084 = vpow2.f32 %v2434_v22 }
 0xdbf   : > { %3086 = vpow2.f32 %v2435_v58 }
 0xdc0   : > { %v3081_v21 = vpop.eup %3080  ;;  %3088 = vtanh.f32 %v2245_v43 }
 0xdc1   : > { %v3083_v5 = vpop.eup %3082  ;;  %v2261_v32 = vadd.f32 1.0, %v3081_v21  ;;  %3090 = vtanh.f32 %v2247_v55 }
 0xdc2   : > { %v2262_v27 = vadd.f32 1.0, %v3083_v5 }
 0xdc3   : > { %3092 = vrcp.f32 %v2261_v32 }
 0xdc4   : > { %3094 = vrcp.f32 %v2262_v27 }
 0xdc8   : > { %v3085_v48 = vpop.eup %3084 }
 0xdc9   : > { %v3087_v49 = vpop.eup %3086  ;;  %v2275_v10 = vadd.f32 1.0, %v3085_v48 }
 0xdca   : > { %v3089_v52 = vpop.eup %3088  ;;  %v2276_v47 = vadd.f32 1.0, %v3087_v49 }
 0xdcb   : > { %v3091_v60 = vpop.eup %3090  ;;  %3096 = vrcp.f32 %v2275_v10 }
 0xdcc   : > { %3098 = vrcp.f32 %v2276_v47 }
 0xdcd   : > { %v3093_v42 = vpop.eup %3092 }
 0xdce   : > { %v3095_v54 = vpop.eup %3094  ;;  %v2281_v19 = vmul.f32 %v3093_v42, %v3089_v52 }
 0xdcf   : > { %v2282_v3 = vmul.f32 %v3095_v54, %v3091_v60 }
 0xdd0   : > { %3100 = vtanh.f32 %v2281_v19 }
 0xdd1   : > { %3102 = vtanh.f32 %v2282_v3 }
 0xdd5   : > { %v3097_v7 = vpop.eup %3096 }
 0xdd6   : > { %v3099_v11 = vpop.eup %3098 }
 0xdda   : > { %v3101_v15 = vpop.eup %3100 }
 0xddb   : > { %v3103_v16 = vpop.eup %3102  ;;  %v2285_v23 = vmul.f32 %v3101_v15, %v3097_v7 }
 0xddc   : > { %v2286_v24 = vmul.f32 %v3103_v16, %v3099_v11 }
 0xddd   : > { %v2287_v31 = vmul.f32 %v3131_v30, %v2285_v23 }
 0xdde   : > { %v2288_v38 = vmul.f32 %v3132_v37, %v2286_v24 }
 0xddf   : > { %v2289_v44 = vrot.slane %v2287_v31, 4 }
 0xde0   : > { %v2295_v45 = vrot.slane %v2288_v38, 4 }
 0xde1   : > { %v2290_v50 = vadd.f32 %v2289_v44, %v2287_v31 }
 0xde2   : > { %v2296_v51 = vadd.f32 %v2295_v45, %v2288_v38 }
 0xde3   : > { %v2291_v56 = vrot.slane %v2290_v50, 2 }
 0xde4   : > { %v2297_v57 = vrot.slane %v2296_v51, 2 }
 0xde5   : > { %v2292_v62 = vadd.f32 %v2291_v56, %v2290_v50 }
 0xde6   : > { %v2298_v63 = vadd.f32 %v2297_v57, %v2296_v51 }
 0xde7   : > { %v2293_v6 = vrot.slane %v2292_v62, 1 }
 0xde8   : > { %v2299_v8 = vrot.slane %v2298_v63, 1 }
 0xde9   : > { %v2294_v17 = vadd.f32 %v2293_v6, %v2292_v62 }
 0xdea   : > { %v2300_v18 = vadd.f32 %v2299_v8, %v2298_v63 }
 0xdeb   : > { %v2301_v25 = vadd.f32 %v2294_v17, %v3750_v1 }
 0xdec   : > { %v2302_v26 = vadd.f32 %v2300_v18, %v3752_v39 }
 0xdee   : > { %v2305_v35 = vcombine.low %v2301_v25, %v2302_v26 }
 0xdf0   : > { %v2312_v36 = vrot.slane %v2305_v35, %v3756_v14 }
 0xdf2   : > { %v2319_v46 = vrot.slane %v2312_v36, %v3756_v14 }
 0xdf4   : > { %2321 = vst.msk [vmem:[%s3763_s28 + $0x6] sm:$0x3] %vm3765_vm3, %v2319_v46 }
 0xdf5 PF: > { %s14_s15 = sadd.s32 1, %s3139_s15  }
 0xdf6   : > { %p11_p5 = scmp.ge.s32.totalorder %s14_s15, 6  }
 0xdf8   :  { %13 = sbr.rel (!%p11_p5) target bundleno = 1 (0x1), region = 67 }

</bundles_post_ra>
